<compile_context>
chip_gen: v6e
topology: v6e:2x2x1
jax: 0.10.0
libtpu: 0.0.40
codegen_flags: <defaults>
</compile_context>

<pallas_src>
import math

import jax
import jax.numpy as jnp
from jax.experimental import pallas as pl
from jax.experimental.pallas import tpu as pltpu  # noqa: F401  (TPU backend assumed)

# ---- model hyper-parameters (small, consistent with the module) -------------
D_MODEL = 32       # d_model
NHEAD = 4          # nhead
HEAD_DIM = D_MODEL // NHEAD
LAST_DIM = 64      # last_dim
DIM_FF = 256       # linear1 hidden
L_TGT = 8          # target sequence length
S_MEM = 16         # memory sequence length
BATCH = 2          # batch size
EPS = 1e-5         # nn.LayerNorm default


# ---- in-kernel math helpers ---------------------------------------------------
def _layernorm(x, gamma, beta):
    mu = jnp.mean(x, axis=-1, keepdims=True)
    var = jnp.mean((x - mu) ** 2, axis=-1, keepdims=True)
    return (x - mu) * jax.lax.rsqrt(var + EPS) * gamma + beta


def _attention(q, k, v, n_batch, lq, sk, wo_t, bo):
    """Multi-head attention on batch-major flattened activations.

    q: (n_batch*lq, E), k/v: (n_batch*sk, E) with rows ordered batch-major.
    wo_t: (E, E) = out_proj.weight.T (pre-transposed on host), bo: (1, E).

    All (batch, head) score blocks are stacked on the sublane axis so the softmax is a
    single fused pass; head outputs are accumulated straight into the output projection
    (no lane-axis concatenate).
    """
    scale = 1.0 / math.sqrt(HEAD_DIM)

    blocks = []
    for n in range(n_batch):
        qn = q[n * lq:(n + 1) * lq, :]                     # (lq, E)
        knt = k[n * sk:(n + 1) * sk, :].T                  # (E, sk) — one transpose / batch
        for h in range(NHEAD):
            qh = qn[:, h * HEAD_DIM:(h + 1) * HEAD_DIM]    # (lq, HD)
            kh_t = knt[h * HEAD_DIM:(h + 1) * HEAD_DIM, :]  # (HD, sk)
            blocks.append(jnp.dot(qh, kh_t, preferred_element_type=jnp.float32))
    s = jnp.concatenate(blocks, axis=0) * scale            # (n_batch*H*lq, sk)

    m = jnp.max(s, axis=-1, keepdims=True)
    e = jnp.exp(s - m)
    attn = e * pl.reciprocal(jnp.sum(e, axis=-1, keepdims=True), approx=True)

    outs = []
    for n in range(n_batch):
        vn = v[n * sk:(n + 1) * sk, :]                     # (sk, E)
        acc = None
        for h in range(NHEAD):
            r0 = (n * NHEAD + h) * lq
            a_nh = attn[r0:r0 + lq, :]                                     # (lq, sk)
            o_nh = jnp.dot(a_nh, vn[:, h * HEAD_DIM:(h + 1) * HEAD_DIM],
                           preferred_element_type=jnp.float32)             # (lq, HD)
            c = jnp.dot(o_nh, wo_t[h * HEAD_DIM:(h + 1) * HEAD_DIM, :],
                        preferred_element_type=jnp.float32)                # (lq, E)
            acc = c if acc is None else acc + c
        outs.append(acc)
    return jnp.concatenate(outs, axis=0) + bo              # (n_batch*lq, E)


# ---- the Pallas kernel --------------------------------------------------------
def _decoder_layer_kernel(tgt_ref, mem_ref,
                          sa_wq_ref, sa_wk_ref, sa_wv_ref,
                          sa_bq_ref, sa_bk_ref, sa_bv_ref,
                          sa_wo_ref, sa_bo_ref,
                          ca_wq_ref, ca_wk_ref, ca_wv_ref,
                          ca_bq_ref, ca_bk_ref, ca_bv_ref,
                          ca_wo_ref, ca_bo_ref,
                          w1_ref, b1_ref, w2_ref, b2_ref,
                          g1_ref, be1_ref, g2_ref, be2_ref,
                          out_ref):
    N, L, S, E = BATCH, L_TGT, S_MEM, D_MODEL

    t2d = tgt_ref[...]   # (L, N*E)   seq-first, batch folded into lanes
    m2d = mem_ref[...]   # (S, N*E)

    # Batch-major row slabs: row n*L + l  <->  (seq position l, batch n)
    tb = jnp.concatenate([t2d[:, n * E:(n + 1) * E] for n in range(N)], axis=0)  # (N*L, E)
    mb = jnp.concatenate([m2d[:, n * E:(n + 1) * E] for n in range(N)], axis=0)  # (N*S, E)

    # 1) self-attention + residual + norm1   (dropout1 = identity)
    q = jnp.dot(tb, sa_wq_ref[...], preferred_element_type=jnp.float32) + sa_bq_ref[...]
    k = jnp.dot(tb, sa_wk_ref[...], preferred_element_type=jnp.float32) + sa_bk_ref[...]
    v = jnp.dot(tb, sa_wv_ref[...], preferred_element_type=jnp.float32) + sa_bv_ref[...]
    sa = _attention(q, k, v, N, L, L, sa_wo_ref[...], sa_bo_ref[...])
    x = _layernorm(tb + sa, g1_ref[...], be1_ref[...])

    # 2) cross-attention (memory) + residual + norm2   (dropout2 = identity)
    q2 = jnp.dot(x, ca_wq_ref[...], preferred_element_type=jnp.float32) + ca_bq_ref[...]
    k2 = jnp.dot(mb, ca_wk_ref[...], preferred_element_type=jnp.float32) + ca_bk_ref[...]
    v2 = jnp.dot(mb, ca_wv_ref[...], preferred_element_type=jnp.float32) + ca_bv_ref[...]
    ca = _attention(q2, k2, v2, N, L, S, ca_wo_ref[...], ca_bo_ref[...])
    x = _layernorm(x + ca, g2_ref[...], be2_ref[...])

    # 3) feed-forward head: linear2(relu(linear1(x)))  (dropout = identity)
    h = jnp.maximum(
        jnp.dot(x, w1_ref[...], preferred_element_type=jnp.float32) + b1_ref[...], 0.0)
    y = jnp.dot(h, w2_ref[...], preferred_element_type=jnp.float32) + b2_ref[...]   # (N*L, LAST)

    # lane-dense store: (L, N*LAST_DIM) = (8, 128) -> unmasked full-width vector stores
    out_ref[...] = jnp.concatenate(
        [y[n * L:(n + 1) * L, :] for n in range(N)], axis=1).astype(out_ref.dtype)


# ---- host-side param prep (done once; pre-split / pre-transposed weights) ------
def prepare_kernel_params(p):
    E = D_MODEL
    row = lambda x: jnp.asarray(x, jnp.float32).reshape(1, -1)
    return (
        # self-attention: Wq^T, Wk^T, Wv^T, bq, bk, bv, Wo^T, bo
        p['sa_in_w'][:E].T, p['sa_in_w'][E:2 * E].T, p['sa_in_w'][2 * E:].T,
        row(p['sa_in_b'][:E]), row(p['sa_in_b'][E:2 * E]), row(p['sa_in_b'][2 * E:]),
        p['sa_out_w'].T, row(p['sa_out_b']),
        # cross-attention
        p['ca_in_w'][:E].T, p['ca_in_w'][E:2 * E].T, p['ca_in_w'][2 * E:].T,
        row(p['ca_in_b'][:E]), row(p['ca_in_b'][E:2 * E]), row(p['ca_in_b'][2 * E:]),
        p['ca_out_w'].T, row(p['ca_out_b']),
        # FFN
        p['w1'].T, row(p['b1']), p['w2'].T, row(p['b2']),
        # layer norms
        row(p['g1']), row(p['be1']), row(p['g2']), row(p['be2']),
    )


# ---- wrapper ------------------------------------------------------------------
def ptransformer_decoder_layer(tgt, memory, kernel_params):
    """tgt: (L, N, E), memory: (S, N, E)  ->  (L, N, LAST_DIM)  (PyTorch seq-first)."""
    L, N, E = tgt.shape
    S = memory.shape[0]

    # Free row-major reshapes (no data movement): batch folded into lanes.
    tgt2d = tgt.reshape(L, N * E)
    mem2d = memory.reshape(S, N * E)

    out2d = pl.pallas_call(
        _decoder_layer_kernel,
        out_shape=jax.ShapeDtypeStruct((L, N * LAST_DIM), jnp.float32),
        cost_estimate=pl.CostEstimate(
            flops=1_200_000, transcendentals=1_700, bytes_accessed=150_000),
    )(tgt2d, mem2d, *kernel_params)

    return out2d.reshape(L, N, LAST_DIM)        # free reshape back to (L, N, LAST_DIM)


# ---- pure-JAX reference (independent, PyTorch-faithful math) -------------------
def reference_forward(tgt, memory, p):
    """Follows torch.nn.functional.multi_head_attention_forward / nn.LayerNorm math."""
    E, H, HD = D_MODEL, NHEAD, HEAD_DIM

    def mha(query, key, value, in_w, in_b, out_w, out_b):
        Lq, B, _ = query.shape
        Sk = key.shape[0]
        q = query @ in_w[:E].T + in_b[:E]
        k = key @ in_w[E:2 * E].T + in_b[E:2 * E]
        v = value @ in_w[2 * E:].T + in_b[2 * E:]
        q = q.reshape(Lq, B * H, HD).transpose(1, 0, 2) * (1.0 / math.sqrt(HD))
        k = k.reshape(Sk, B * H, HD).transpose(1, 0, 2)
        v = v.reshape(Sk, B * H, HD).transpose(1, 0, 2)
        attn = jax.nn.softmax(jnp.einsum('bld,bsd->bls', q, k), axis=-1)
        o = jnp.einsum('bls,bsd->bld', attn, v).transpose(1, 0, 2).reshape(Lq, B, E)
        return o @ out_w.T + out_b

    def ln(x, g, b):
        mu = jnp.mean(x, axis=-1, keepdims=True)
        var = jnp.mean((x - mu) ** 2, axis=-1, keepdims=True)
        return (x - mu) / jnp.sqrt(var + EPS) * g + b

    x = ln(tgt + mha(tgt, tgt, tgt,
                     p['sa_in_w'], p['sa_in_b'], p['sa_out_w'], p['sa_out_b']),
           p['g1'], p['be1'])
    x = ln(x + mha(x, memory, memory,
                   p['ca_in_w'], p['ca_in_b'], p['ca_out_w'], p['ca_out_b']),
           p['g2'], p['be2'])
    h = jnp.maximum(x @ p['w1'].T + p['b1'], 0.0)
    return h @ p['w2'].T + p['b2']


# ---- parameter init (PyTorch-style shapes) + demo -------------------------------
def init_params(key):
    ks = jax.random.split(key, 12)
    n = lambda k, shape, s=0.05: jax.random.normal(k, shape, jnp.float32) * s
    E = D_MODEL
    return {
        # self-attention (packed in_proj, like nn.MultiheadAttention)
        'sa_in_w': n(ks[0], (3 * E, E)), 'sa_in_b': n(ks[1], (3 * E,)),
        'sa_out_w': n(ks[2], (E, E)),    'sa_out_b': n(ks[3], (E,)),
        # cross-attention
        'ca_in_w': n(ks[4], (3 * E, E)), 'ca_in_b': n(ks[5], (3 * E,)),
        'ca_out_w': n(ks[6], (E, E)),    'ca_out_b': n(ks[7], (E,)),
        # FFN
        'w1': n(ks[8], (DIM_FF, E)),     'b1': n(ks[9], (DIM_FF,)),
        'w2': n(ks[10], (LAST_DIM, DIM_FF)), 'b2': n(ks[11], (LAST_DIM,)),
        # layernorms (PyTorch default init: gamma=1, beta=0)
        'g1': jnp.ones((E,), jnp.float32), 'be1': jnp.zeros((E,), jnp.float32),
        'g2': jnp.ones((E,), jnp.float32), 'be2': jnp.zeros((E,), jnp.float32),
    }


if __name__ == "__main__":
    key = jax.random.PRNGKey(0)
    k_p, k_t, k_m = jax.random.split(key, 3)

    params = init_params(k_p)
    kparams = prepare_kernel_params(params)

    tgt = jax.random.normal(k_t, (L_TGT, BATCH, D_MODEL), jnp.float32)
    memory = jax.random.normal(k_m, (S_MEM, BATCH, D_MODEL), jnp.float32)

    out = ptransformer_decoder_layer(tgt, memory, kparams)
    out = jax.block_until_ready(out)

    ref = jax.block_until_ready(reference_forward(tgt, memory, params))
    assert out.shape == (L_TGT, BATCH, LAST_DIM), out.shape
    assert jnp.allclose(out, ref, atol=2e-2, rtol=2e-2), "kernel/reference mismatch"

    print("KERNEL_OK")
</pallas_src>

<mosaic_0001>
module attributes {stable_mosaic.version = 11 : i64} {
  func.func @_decoder_layer_kernel(%arg0: memref<8x64xf32, #tpu.memory_space<vmem>>, %arg1: memref<16x64xf32, #tpu.memory_space<vmem>>, %arg2: memref<32x32xf32, #tpu.memory_space<vmem>>, %arg3: memref<32x32xf32, #tpu.memory_space<vmem>>, %arg4: memref<32x32xf32, #tpu.memory_space<vmem>>, %arg5: memref<1x32xf32, #tpu.memory_space<vmem>>, %arg6: memref<1x32xf32, #tpu.memory_space<vmem>>, %arg7: memref<1x32xf32, #tpu.memory_space<vmem>>, %arg8: memref<32x32xf32, #tpu.memory_space<vmem>>, %arg9: memref<1x32xf32, #tpu.memory_space<vmem>>, %arg10: memref<32x32xf32, #tpu.memory_space<vmem>>, %arg11: memref<32x32xf32, #tpu.memory_space<vmem>>, %arg12: memref<32x32xf32, #tpu.memory_space<vmem>>, %arg13: memref<1x32xf32, #tpu.memory_space<vmem>>, %arg14: memref<1x32xf32, #tpu.memory_space<vmem>>, %arg15: memref<1x32xf32, #tpu.memory_space<vmem>>, %arg16: memref<32x32xf32, #tpu.memory_space<vmem>>, %arg17: memref<1x32xf32, #tpu.memory_space<vmem>>, %arg18: memref<32x256xf32, #tpu.memory_space<vmem>>, %arg19: memref<1x256xf32, #tpu.memory_space<vmem>>, %arg20: memref<256x64xf32, #tpu.memory_space<vmem>>, %arg21: memref<1x64xf32, #tpu.memory_space<vmem>>, %arg22: memref<1x32xf32, #tpu.memory_space<vmem>>, %arg23: memref<1x32xf32, #tpu.memory_space<vmem>>, %arg24: memref<1x32xf32, #tpu.memory_space<vmem>>, %arg25: memref<1x32xf32, #tpu.memory_space<vmem>>, %arg26: memref<8x128xf32, #tpu.memory_space<vmem>>) attributes {dimension_semantics = [], scalar_prefetch = 0 : i64, scratch_operands = 0 : i64, tpu.core_type = #tpu.core_type<tc>} {
    %c0 = arith.constant 0 : index
    %c0_0 = arith.constant 0 : index
    %0 = vector.load %arg0[%c0, %c0_0] : memref<8x64xf32, #tpu.memory_space<vmem>>, vector<8x64xf32>
    %c0_1 = arith.constant 0 : index
    %c0_2 = arith.constant 0 : index
    %1 = vector.load %arg1[%c0_1, %c0_2] : memref<16x64xf32, #tpu.memory_space<vmem>>, vector<16x64xf32>
    %2 = vector.extract_strided_slice %0 {offsets = [0, 0], sizes = [8, 32], strides = [1, 1]} : vector<8x64xf32> to vector<8x32xf32>
    %3 = vector.extract_strided_slice %0 {offsets = [0, 32], sizes = [8, 32], strides = [1, 1]} : vector<8x64xf32> to vector<8x32xf32>
    %4 = tpu.concatenate %2, %3 in 0 : vector<8x32xf32>, vector<8x32xf32> -> vector<16x32xf32>
    %5 = vector.extract_strided_slice %1 {offsets = [0, 0], sizes = [16, 32], strides = [1, 1]} : vector<16x64xf32> to vector<16x32xf32>
    %6 = vector.extract_strided_slice %1 {offsets = [0, 32], sizes = [16, 32], strides = [1, 1]} : vector<16x64xf32> to vector<16x32xf32>
    %7 = tpu.concatenate %5, %6 in 0 : vector<16x32xf32>, vector<16x32xf32> -> vector<32x32xf32>
    %c0_3 = arith.constant 0 : index
    %c0_4 = arith.constant 0 : index
    %8 = vector.load %arg2[%c0_3, %c0_4] : memref<32x32xf32, #tpu.memory_space<vmem>>, vector<32x32xf32>
    %cst = arith.constant dense<0.000000e+00> : vector<16x32xf32>
    %9 = tpu.matmul %4, %8, %cst {dimension_numbers = #tpu.dot_dimension_numbers<[1], [0], [0], [1], [0, 0, 1, 1], [], []>} : vector<16x32xf32>, vector<32x32xf32>, vector<16x32xf32> -> vector<16x32xf32>
    %c0_5 = arith.constant 0 : index
    %c0_6 = arith.constant 0 : index
    %10 = vector.load %arg5[%c0_5, %c0_6] : memref<1x32xf32, #tpu.memory_space<vmem>>, vector<1x32xf32>
    %11 = vector.broadcast %10 : vector<1x32xf32> to vector<16x32xf32>
    %12 = arith.addf %9, %11 : vector<16x32xf32>
    %c0_7 = arith.constant 0 : index
    %c0_8 = arith.constant 0 : index
    %13 = vector.load %arg3[%c0_7, %c0_8] : memref<32x32xf32, #tpu.memory_space<vmem>>, vector<32x32xf32>
    %cst_9 = arith.constant dense<0.000000e+00> : vector<16x32xf32>
    %14 = tpu.matmul %4, %13, %cst_9 {dimension_numbers = #tpu.dot_dimension_numbers<[1], [0], [0], [1], [0, 0, 1, 1], [], []>} : vector<16x32xf32>, vector<32x32xf32>, vector<16x32xf32> -> vector<16x32xf32>
    %c0_10 = arith.constant 0 : index
    %c0_11 = arith.constant 0 : index
    %15 = vector.load %arg6[%c0_10, %c0_11] : memref<1x32xf32, #tpu.memory_space<vmem>>, vector<1x32xf32>
    %16 = vector.broadcast %15 : vector<1x32xf32> to vector<16x32xf32>
    %17 = arith.addf %14, %16 : vector<16x32xf32>
    %c0_12 = arith.constant 0 : index
    %c0_13 = arith.constant 0 : index
    %18 = vector.load %arg4[%c0_12, %c0_13] : memref<32x32xf32, #tpu.memory_space<vmem>>, vector<32x32xf32>
    %cst_14 = arith.constant dense<0.000000e+00> : vector<16x32xf32>
    %19 = tpu.matmul %4, %18, %cst_14 {dimension_numbers = #tpu.dot_dimension_numbers<[1], [0], [0], [1], [0, 0, 1, 1], [], []>} : vector<16x32xf32>, vector<32x32xf32>, vector<16x32xf32> -> vector<16x32xf32>
    %c0_15 = arith.constant 0 : index
    %c0_16 = arith.constant 0 : index
    %20 = vector.load %arg7[%c0_15, %c0_16] : memref<1x32xf32, #tpu.memory_space<vmem>>, vector<1x32xf32>
    %21 = vector.broadcast %20 : vector<1x32xf32> to vector<16x32xf32>
    %22 = arith.addf %19, %21 : vector<16x32xf32>
    %c0_17 = arith.constant 0 : index
    %c0_18 = arith.constant 0 : index
    %23 = vector.load %arg8[%c0_17, %c0_18] : memref<32x32xf32, #tpu.memory_space<vmem>>, vector<32x32xf32>
    %c0_19 = arith.constant 0 : index
    %c0_20 = arith.constant 0 : index
    %24 = vector.load %arg9[%c0_19, %c0_20] : memref<1x32xf32, #tpu.memory_space<vmem>>, vector<1x32xf32>
    %25 = vector.extract_strided_slice %12 {offsets = [0, 0], sizes = [8, 32], strides = [1, 1]} : vector<16x32xf32> to vector<8x32xf32>
    %26 = vector.extract_strided_slice %17 {offsets = [0, 0], sizes = [8, 32], strides = [1, 1]} : vector<16x32xf32> to vector<8x32xf32>
    %27 = tpu.transpose %26, [1, 0] : vector<8x32xf32> -> vector<32x8xf32>
    %28 = vector.extract_strided_slice %25 {offsets = [0, 0], sizes = [8, 8], strides = [1, 1]} : vector<8x32xf32> to vector<8x8xf32>
    %29 = vector.extract_strided_slice %27 {offsets = [0, 0], sizes = [8, 8], strides = [1, 1]} : vector<32x8xf32> to vector<8x8xf32>
    %cst_21 = arith.constant dense<0.000000e+00> : vector<8x8xf32>
    %30 = tpu.matmul %28, %29, %cst_21 {dimension_numbers = #tpu.dot_dimension_numbers<[1], [0], [0], [1], [0, 0, 1, 1], [], []>} : vector<8x8xf32>, vector<8x8xf32>, vector<8x8xf32> -> vector<8x8xf32>
    %31 = vector.extract_strided_slice %25 {offsets = [0, 8], sizes = [8, 8], strides = [1, 1]} : vector<8x32xf32> to vector<8x8xf32>
    %32 = vector.extract_strided_slice %27 {offsets = [8, 0], sizes = [8, 8], strides = [1, 1]} : vector<32x8xf32> to vector<8x8xf32>
    %cst_22 = arith.constant dense<0.000000e+00> : vector<8x8xf32>
    %33 = tpu.matmul %31, %32, %cst_22 {dimension_numbers = #tpu.dot_dimension_numbers<[1], [0], [0], [1], [0, 0, 1, 1], [], []>} : vector<8x8xf32>, vector<8x8xf32>, vector<8x8xf32> -> vector<8x8xf32>
    %34 = vector.extract_strided_slice %25 {offsets = [0, 16], sizes = [8, 8], strides = [1, 1]} : vector<8x32xf32> to vector<8x8xf32>
    %35 = vector.extract_strided_slice %27 {offsets = [16, 0], sizes = [8, 8], strides = [1, 1]} : vector<32x8xf32> to vector<8x8xf32>
    %cst_23 = arith.constant dense<0.000000e+00> : vector<8x8xf32>
    %36 = tpu.matmul %34, %35, %cst_23 {dimension_numbers = #tpu.dot_dimension_numbers<[1], [0], [0], [1], [0, 0, 1, 1], [], []>} : vector<8x8xf32>, vector<8x8xf32>, vector<8x8xf32> -> vector<8x8xf32>
    %37 = vector.extract_strided_slice %25 {offsets = [0, 24], sizes = [8, 8], strides = [1, 1]} : vector<8x32xf32> to vector<8x8xf32>
    %38 = vector.extract_strided_slice %27 {offsets = [24, 0], sizes = [8, 8], strides = [1, 1]} : vector<32x8xf32> to vector<8x8xf32>
    %cst_24 = arith.constant dense<0.000000e+00> : vector<8x8xf32>
    %39 = tpu.matmul %37, %38, %cst_24 {dimension_numbers = #tpu.dot_dimension_numbers<[1], [0], [0], [1], [0, 0, 1, 1], [], []>} : vector<8x8xf32>, vector<8x8xf32>, vector<8x8xf32> -> vector<8x8xf32>
    %40 = vector.extract_strided_slice %12 {offsets = [8, 0], sizes = [8, 32], strides = [1, 1]} : vector<16x32xf32> to vector<8x32xf32>
    %41 = vector.extract_strided_slice %17 {offsets = [8, 0], sizes = [8, 32], strides = [1, 1]} : vector<16x32xf32> to vector<8x32xf32>
    %42 = tpu.transpose %41, [1, 0] : vector<8x32xf32> -> vector<32x8xf32>
    %43 = vector.extract_strided_slice %40 {offsets = [0, 0], sizes = [8, 8], strides = [1, 1]} : vector<8x32xf32> to vector<8x8xf32>
    %44 = vector.extract_strided_slice %42 {offsets = [0, 0], sizes = [8, 8], strides = [1, 1]} : vector<32x8xf32> to vector<8x8xf32>
    %cst_25 = arith.constant dense<0.000000e+00> : vector<8x8xf32>
    %45 = tpu.matmul %43, %44, %cst_25 {dimension_numbers = #tpu.dot_dimension_numbers<[1], [0], [0], [1], [0, 0, 1, 1], [], []>} : vector<8x8xf32>, vector<8x8xf32>, vector<8x8xf32> -> vector<8x8xf32>
    %46 = vector.extract_strided_slice %40 {offsets = [0, 8], sizes = [8, 8], strides = [1, 1]} : vector<8x32xf32> to vector<8x8xf32>
    %47 = vector.extract_strided_slice %42 {offsets = [8, 0], sizes = [8, 8], strides = [1, 1]} : vector<32x8xf32> to vector<8x8xf32>
    %cst_26 = arith.constant dense<0.000000e+00> : vector<8x8xf32>
    %48 = tpu.matmul %46, %47, %cst_26 {dimension_numbers = #tpu.dot_dimension_numbers<[1], [0], [0], [1], [0, 0, 1, 1], [], []>} : vector<8x8xf32>, vector<8x8xf32>, vector<8x8xf32> -> vector<8x8xf32>
    %49 = vector.extract_strided_slice %40 {offsets = [0, 16], sizes = [8, 8], strides = [1, 1]} : vector<8x32xf32> to vector<8x8xf32>
    %50 = vector.extract_strided_slice %42 {offsets = [16, 0], sizes = [8, 8], strides = [1, 1]} : vector<32x8xf32> to vector<8x8xf32>
    %cst_27 = arith.constant dense<0.000000e+00> : vector<8x8xf32>
    %51 = tpu.matmul %49, %50, %cst_27 {dimension_numbers = #tpu.dot_dimension_numbers<[1], [0], [0], [1], [0, 0, 1, 1], [], []>} : vector<8x8xf32>, vector<8x8xf32>, vector<8x8xf32> -> vector<8x8xf32>
    %52 = vector.extract_strided_slice %40 {offsets = [0, 24], sizes = [8, 8], strides = [1, 1]} : vector<8x32xf32> to vector<8x8xf32>
    %53 = vector.extract_strided_slice %42 {offsets = [24, 0], sizes = [8, 8], strides = [1, 1]} : vector<32x8xf32> to vector<8x8xf32>
    %cst_28 = arith.constant dense<0.000000e+00> : vector<8x8xf32>
    %54 = tpu.matmul %52, %53, %cst_28 {dimension_numbers = #tpu.dot_dimension_numbers<[1], [0], [0], [1], [0, 0, 1, 1], [], []>} : vector<8x8xf32>, vector<8x8xf32>, vector<8x8xf32> -> vector<8x8xf32>
    %55 = tpu.concatenate %30, %33, %36, %39, %45, %48, %51, %54 in 0 : vector<8x8xf32>, vector<8x8xf32>, vector<8x8xf32>, vector<8x8xf32>, vector<8x8xf32>, vector<8x8xf32>, vector<8x8xf32>, vector<8x8xf32> -> vector<64x8xf32>
    %cst_29 = arith.constant 0.353553385 : f32
    %56 = vector.broadcast %cst_29 : f32 to vector<64x8xf32>
    %57 = arith.mulf %55, %56 : vector<64x8xf32>
    %cst_30 = arith.constant dense<0xFF800000> : vector<64xf32>
    %58 = vector.multi_reduction <maximumf>, %57, %cst_30 [1] : vector<64x8xf32> to vector<64xf32>
    %59 = vector.shape_cast %58 : vector<64xf32> to vector<64x1xf32>
    %60 = vector.broadcast %59 : vector<64x1xf32> to vector<64x8xf32>
    %61 = arith.subf %57, %60 : vector<64x8xf32>
    %62 = math.exp %61 : vector<64x8xf32>
    %cst_31 = arith.constant dense<0.000000e+00> : vector<64xf32>
    %63 = vector.multi_reduction <add>, %62, %cst_31 [1] : vector<64x8xf32> to vector<64xf32>
    %64 = vector.shape_cast %63 : vector<64xf32> to vector<64x1xf32>
    %65 = tpu.reciprocal %64 {approx = true} : vector<64x1xf32> -> vector<64x1xf32>
    %66 = vector.broadcast %65 : vector<64x1xf32> to vector<64x8xf32>
    %67 = arith.mulf %62, %66 : vector<64x8xf32>
    %68 = vector.extract_strided_slice %22 {offsets = [0, 0], sizes = [8, 32], strides = [1, 1]} : vector<16x32xf32> to vector<8x32xf32>
    %69 = vector.extract_strided_slice %67 {offsets = [0, 0], sizes = [8, 8], strides = [1, 1]} : vector<64x8xf32> to vector<8x8xf32>
    %70 = vector.extract_strided_slice %68 {offsets = [0, 0], sizes = [8, 8], strides = [1, 1]} : vector<8x32xf32> to vector<8x8xf32>
    %cst_32 = arith.constant dense<0.000000e+00> : vector<8x8xf32>
    %71 = tpu.matmul %69, %70, %cst_32 {dimension_numbers = #tpu.dot_dimension_numbers<[1], [0], [0], [1], [0, 0, 1, 1], [], []>} : vector<8x8xf32>, vector<8x8xf32>, vector<8x8xf32> -> vector<8x8xf32>
    %72 = vector.extract_strided_slice %23 {offsets = [0, 0], sizes = [8, 32], strides = [1, 1]} : vector<32x32xf32> to vector<8x32xf32>
    %cst_33 = arith.constant dense<0.000000e+00> : vector<8x32xf32>
    %73 = tpu.matmul %71, %72, %cst_33 {dimension_numbers = #tpu.dot_dimension_numbers<[1], [0], [0], [1], [0, 0, 1, 1], [], []>} : vector<8x8xf32>, vector<8x32xf32>, vector<8x32xf32> -> vector<8x32xf32>
    %74 = vector.extract_strided_slice %67 {offsets = [8, 0], sizes = [8, 8], strides = [1, 1]} : vector<64x8xf32> to vector<8x8xf32>
    %75 = vector.extract_strided_slice %68 {offsets = [0, 8], sizes = [8, 8], strides = [1, 1]} : vector<8x32xf32> to vector<8x8xf32>
    %cst_34 = arith.constant dense<0.000000e+00> : vector<8x8xf32>
    %76 = tpu.matmul %74, %75, %cst_34 {dimension_numbers = #tpu.dot_dimension_numbers<[1], [0], [0], [1], [0, 0, 1, 1], [], []>} : vector<8x8xf32>, vector<8x8xf32>, vector<8x8xf32> -> vector<8x8xf32>
    %77 = vector.extract_strided_slice %23 {offsets = [8, 0], sizes = [8, 32], strides = [1, 1]} : vector<32x32xf32> to vector<8x32xf32>
    %cst_35 = arith.constant dense<0.000000e+00> : vector<8x32xf32>
    %78 = tpu.matmul %76, %77, %cst_35 {dimension_numbers = #tpu.dot_dimension_numbers<[1], [0], [0], [1], [0, 0, 1, 1], [], []>} : vector<8x8xf32>, vector<8x32xf32>, vector<8x32xf32> -> vector<8x32xf32>
    %79 = arith.addf %73, %78 : vector<8x32xf32>
    %80 = vector.extract_strided_slice %67 {offsets = [16, 0], sizes = [8, 8], strides = [1, 1]} : vector<64x8xf32> to vector<8x8xf32>
    %81 = vector.extract_strided_slice %68 {offsets = [0, 16], sizes = [8, 8], strides = [1, 1]} : vector<8x32xf32> to vector<8x8xf32>
    %cst_36 = arith.constant dense<0.000000e+00> : vector<8x8xf32>
    %82 = tpu.matmul %80, %81, %cst_36 {dimension_numbers = #tpu.dot_dimension_numbers<[1], [0], [0], [1], [0, 0, 1, 1], [], []>} : vector<8x8xf32>, vector<8x8xf32>, vector<8x8xf32> -> vector<8x8xf32>
    %83 = vector.extract_strided_slice %23 {offsets = [16, 0], sizes = [8, 32], strides = [1, 1]} : vector<32x32xf32> to vector<8x32xf32>
    %cst_37 = arith.constant dense<0.000000e+00> : vector<8x32xf32>
    %84 = tpu.matmul %82, %83, %cst_37 {dimension_numbers = #tpu.dot_dimension_numbers<[1], [0], [0], [1], [0, 0, 1, 1], [], []>} : vector<8x8xf32>, vector<8x32xf32>, vector<8x32xf32> -> vector<8x32xf32>
    %85 = arith.addf %79, %84 : vector<8x32xf32>
    %86 = vector.extract_strided_slice %67 {offsets = [24, 0], sizes = [8, 8], strides = [1, 1]} : vector<64x8xf32> to vector<8x8xf32>
    %87 = vector.extract_strided_slice %68 {offsets = [0, 24], sizes = [8, 8], strides = [1, 1]} : vector<8x32xf32> to vector<8x8xf32>
    %cst_38 = arith.constant dense<0.000000e+00> : vector<8x8xf32>
    %88 = tpu.matmul %86, %87, %cst_38 {dimension_numbers = #tpu.dot_dimension_numbers<[1], [0], [0], [1], [0, 0, 1, 1], [], []>} : vector<8x8xf32>, vector<8x8xf32>, vector<8x8xf32> -> vector<8x8xf32>
    %89 = vector.extract_strided_slice %23 {offsets = [24, 0], sizes = [8, 32], strides = [1, 1]} : vector<32x32xf32> to vector<8x32xf32>
    %cst_39 = arith.constant dense<0.000000e+00> : vector<8x32xf32>
    %90 = tpu.matmul %88, %89, %cst_39 {dimension_numbers = #tpu.dot_dimension_numbers<[1], [0], [0], [1], [0, 0, 1, 1], [], []>} : vector<8x8xf32>, vector<8x32xf32>, vector<8x32xf32> -> vector<8x32xf32>
    %91 = arith.addf %85, %90 : vector<8x32xf32>
    %92 = vector.extract_strided_slice %22 {offsets = [8, 0], sizes = [8, 32], strides = [1, 1]} : vector<16x32xf32> to vector<8x32xf32>
    %93 = vector.extract_strided_slice %67 {offsets = [32, 0], sizes = [8, 8], strides = [1, 1]} : vector<64x8xf32> to vector<8x8xf32>
    %94 = vector.extract_strided_slice %92 {offsets = [0, 0], sizes = [8, 8], strides = [1, 1]} : vector<8x32xf32> to vector<8x8xf32>
    %cst_40 = arith.constant dense<0.000000e+00> : vector<8x8xf32>
    %95 = tpu.matmul %93, %94, %cst_40 {dimension_numbers = #tpu.dot_dimension_numbers<[1], [0], [0], [1], [0, 0, 1, 1], [], []>} : vector<8x8xf32>, vector<8x8xf32>, vector<8x8xf32> -> vector<8x8xf32>
    %96 = vector.extract_strided_slice %23 {offsets = [0, 0], sizes = [8, 32], strides = [1, 1]} : vector<32x32xf32> to vector<8x32xf32>
    %cst_41 = arith.constant dense<0.000000e+00> : vector<8x32xf32>
    %97 = tpu.matmul %95, %96, %cst_41 {dimension_numbers = #tpu.dot_dimension_numbers<[1], [0], [0], [1], [0, 0, 1, 1], [], []>} : vector<8x8xf32>, vector<8x32xf32>, vector<8x32xf32> -> vector<8x32xf32>
    %98 = vector.extract_strided_slice %67 {offsets = [40, 0], sizes = [8, 8], strides = [1, 1]} : vector<64x8xf32> to vector<8x8xf32>
    %99 = vector.extract_strided_slice %92 {offsets = [0, 8], sizes = [8, 8], strides = [1, 1]} : vector<8x32xf32> to vector<8x8xf32>
    %cst_42 = arith.constant dense<0.000000e+00> : vector<8x8xf32>
    %100 = tpu.matmul %98, %99, %cst_42 {dimension_numbers = #tpu.dot_dimension_numbers<[1], [0], [0], [1], [0, 0, 1, 1], [], []>} : vector<8x8xf32>, vector<8x8xf32>, vector<8x8xf32> -> vector<8x8xf32>
    %101 = vector.extract_strided_slice %23 {offsets = [8, 0], sizes = [8, 32], strides = [1, 1]} : vector<32x32xf32> to vector<8x32xf32>
    %cst_43 = arith.constant dense<0.000000e+00> : vector<8x32xf32>
    %102 = tpu.matmul %100, %101, %cst_43 {dimension_numbers = #tpu.dot_dimension_numbers<[1], [0], [0], [1], [0, 0, 1, 1], [], []>} : vector<8x8xf32>, vector<8x32xf32>, vector<8x32xf32> -> vector<8x32xf32>
    %103 = arith.addf %97, %102 : vector<8x32xf32>
    %104 = vector.extract_strided_slice %67 {offsets = [48, 0], sizes = [8, 8], strides = [1, 1]} : vector<64x8xf32> to vector<8x8xf32>
    %105 = vector.extract_strided_slice %92 {offsets = [0, 16], sizes = [8, 8], strides = [1, 1]} : vector<8x32xf32> to vector<8x8xf32>
    %cst_44 = arith.constant dense<0.000000e+00> : vector<8x8xf32>
    %106 = tpu.matmul %104, %105, %cst_44 {dimension_numbers = #tpu.dot_dimension_numbers<[1], [0], [0], [1], [0, 0, 1, 1], [], []>} : vector<8x8xf32>, vector<8x8xf32>, vector<8x8xf32> -> vector<8x8xf32>
    %107 = vector.extract_strided_slice %23 {offsets = [16, 0], sizes = [8, 32], strides = [1, 1]} : vector<32x32xf32> to vector<8x32xf32>
    %cst_45 = arith.constant dense<0.000000e+00> : vector<8x32xf32>
    %108 = tpu.matmul %106, %107, %cst_45 {dimension_numbers = #tpu.dot_dimension_numbers<[1], [0], [0], [1], [0, 0, 1, 1], [], []>} : vector<8x8xf32>, vector<8x32xf32>, vector<8x32xf32> -> vector<8x32xf32>
    %109 = arith.addf %103, %108 : vector<8x32xf32>
    %110 = vector.extract_strided_slice %67 {offsets = [56, 0], sizes = [8, 8], strides = [1, 1]} : vector<64x8xf32> to vector<8x8xf32>
    %111 = vector.extract_strided_slice %92 {offsets = [0, 24], sizes = [8, 8], strides = [1, 1]} : vector<8x32xf32> to vector<8x8xf32>
    %cst_46 = arith.constant dense<0.000000e+00> : vector<8x8xf32>
    %112 = tpu.matmul %110, %111, %cst_46 {dimension_numbers = #tpu.dot_dimension_numbers<[1], [0], [0], [1], [0, 0, 1, 1], [], []>} : vector<8x8xf32>, vector<8x8xf32>, vector<8x8xf32> -> vector<8x8xf32>
    %113 = vector.extract_strided_slice %23 {offsets = [24, 0], sizes = [8, 32], strides = [1, 1]} : vector<32x32xf32> to vector<8x32xf32>
    %cst_47 = arith.constant dense<0.000000e+00> : vector<8x32xf32>
    %114 = tpu.matmul %112, %113, %cst_47 {dimension_numbers = #tpu.dot_dimension_numbers<[1], [0], [0], [1], [0, 0, 1, 1], [], []>} : vector<8x8xf32>, vector<8x32xf32>, vector<8x32xf32> -> vector<8x32xf32>
    %115 = arith.addf %109, %114 : vector<8x32xf32>
    %116 = tpu.concatenate %91, %115 in 0 : vector<8x32xf32>, vector<8x32xf32> -> vector<16x32xf32>
    %117 = vector.broadcast %24 : vector<1x32xf32> to vector<16x32xf32>
    %118 = arith.addf %116, %117 : vector<16x32xf32>
    %119 = arith.addf %4, %118 : vector<16x32xf32>
    %c0_48 = arith.constant 0 : index
    %c0_49 = arith.constant 0 : index
    %120 = vector.load %arg22[%c0_48, %c0_49] : memref<1x32xf32, #tpu.memory_space<vmem>>, vector<1x32xf32>
    %c0_50 = arith.constant 0 : index
    %c0_51 = arith.constant 0 : index
    %121 = vector.load %arg23[%c0_50, %c0_51] : memref<1x32xf32, #tpu.memory_space<vmem>>, vector<1x32xf32>
    %cst_52 = arith.constant dense<0.000000e+00> : vector<16xf32>
    %122 = vector.multi_reduction <add>, %119, %cst_52 [1] : vector<16x32xf32> to vector<16xf32>
    %123 = vector.shape_cast %122 : vector<16xf32> to vector<16x1xf32>
    %cst_53 = arith.constant 3.200000e+01 : f32
    %124 = vector.broadcast %cst_53 : f32 to vector<16x1xf32>
    %125 = arith.divf %123, %124 : vector<16x1xf32>
    %126 = vector.broadcast %125 : vector<16x1xf32> to vector<16x32xf32>
    %127 = arith.subf %119, %126 : vector<16x32xf32>
    %128 = arith.mulf %127, %127 : vector<16x32xf32>
    %cst_54 = arith.constant dense<0.000000e+00> : vector<16xf32>
    %129 = vector.multi_reduction <add>, %128, %cst_54 [1] : vector<16x32xf32> to vector<16xf32>
    %130 = vector.shape_cast %129 : vector<16xf32> to vector<16x1xf32>
    %cst_55 = arith.constant 3.200000e+01 : f32
    %131 = vector.broadcast %cst_55 : f32 to vector<16x1xf32>
    %132 = arith.divf %130, %131 : vector<16x1xf32>
    %133 = vector.broadcast %125 : vector<16x1xf32> to vector<16x32xf32>
    %134 = arith.subf %119, %133 : vector<16x32xf32>
    %cst_56 = arith.constant 9.99999974E-6 : f32
    %135 = vector.broadcast %cst_56 : f32 to vector<16x1xf32>
    %136 = arith.addf %132, %135 : vector<16x1xf32>
    %137 = math.rsqrt %136 : vector<16x1xf32>
    %138 = vector.broadcast %137 : vector<16x1xf32> to vector<16x32xf32>
    %139 = arith.mulf %134, %138 : vector<16x32xf32>
    %140 = vector.broadcast %120 : vector<1x32xf32> to vector<16x32xf32>
    %141 = arith.mulf %139, %140 : vector<16x32xf32>
    %142 = vector.broadcast %121 : vector<1x32xf32> to vector<16x32xf32>
    %143 = arith.addf %141, %142 : vector<16x32xf32>
    %c0_57 = arith.constant 0 : index
    %c0_58 = arith.constant 0 : index
    %144 = vector.load %arg10[%c0_57, %c0_58] : memref<32x32xf32, #tpu.memory_space<vmem>>, vector<32x32xf32>
    %cst_59 = arith.constant dense<0.000000e+00> : vector<16x32xf32>
    %145 = tpu.matmul %143, %144, %cst_59 {dimension_numbers = #tpu.dot_dimension_numbers<[1], [0], [0], [1], [0, 0, 1, 1], [], []>} : vector<16x32xf32>, vector<32x32xf32>, vector<16x32xf32> -> vector<16x32xf32>
    %c0_60 = arith.constant 0 : index
    %c0_61 = arith.constant 0 : index
    %146 = vector.load %arg13[%c0_60, %c0_61] : memref<1x32xf32, #tpu.memory_space<vmem>>, vector<1x32xf32>
    %147 = vector.broadcast %146 : vector<1x32xf32> to vector<16x32xf32>
    %148 = arith.addf %145, %147 : vector<16x32xf32>
    %c0_62 = arith.constant 0 : index
    %c0_63 = arith.constant 0 : index
    %149 = vector.load %arg11[%c0_62, %c0_63] : memref<32x32xf32, #tpu.memory_space<vmem>>, vector<32x32xf32>
    %cst_64 = arith.constant dense<0.000000e+00> : vector<32x32xf32>
    %150 = tpu.matmul %7, %149, %cst_64 {dimension_numbers = #tpu.dot_dimension_numbers<[1], [0], [0], [1], [0, 0, 1, 1], [], []>} : vector<32x32xf32>, vector<32x32xf32>, vector<32x32xf32> -> vector<32x32xf32>
    %c0_65 = arith.constant 0 : index
    %c0_66 = arith.constant 0 : index
    %151 = vector.load %arg14[%c0_65, %c0_66] : memref<1x32xf32, #tpu.memory_space<vmem>>, vector<1x32xf32>
    %152 = vector.broadcast %151 : vector<1x32xf32> to vector<32x32xf32>
    %153 = arith.addf %150, %152 : vector<32x32xf32>
    %c0_67 = arith.constant 0 : index
    %c0_68 = arith.constant 0 : index
    %154 = vector.load %arg12[%c0_67, %c0_68] : memref<32x32xf32, #tpu.memory_space<vmem>>, vector<32x32xf32>
    %cst_69 = arith.constant dense<0.000000e+00> : vector<32x32xf32>
    %155 = tpu.matmul %7, %154, %cst_69 {dimension_numbers = #tpu.dot_dimension_numbers<[1], [0], [0], [1], [0, 0, 1, 1], [], []>} : vector<32x32xf32>, vector<32x32xf32>, vector<32x32xf32> -> vector<32x32xf32>
    %c0_70 = arith.constant 0 : index
    %c0_71 = arith.constant 0 : index
    %156 = vector.load %arg15[%c0_70, %c0_71] : memref<1x32xf32, #tpu.memory_space<vmem>>, vector<1x32xf32>
    %157 = vector.broadcast %156 : vector<1x32xf32> to vector<32x32xf32>
    %158 = arith.addf %155, %157 : vector<32x32xf32>
    %c0_72 = arith.constant 0 : index
    %c0_73 = arith.constant 0 : index
    %159 = vector.load %arg16[%c0_72, %c0_73] : memref<32x32xf32, #tpu.memory_space<vmem>>, vector<32x32xf32>
    %c0_74 = arith.constant 0 : index
    %c0_75 = arith.constant 0 : index
    %160 = vector.load %arg17[%c0_74, %c0_75] : memref<1x32xf32, #tpu.memory_space<vmem>>, vector<1x32xf32>
    %161 = vector.extract_strided_slice %148 {offsets = [0, 0], sizes = [8, 32], strides = [1, 1]} : vector<16x32xf32> to vector<8x32xf32>
    %162 = vector.extract_strided_slice %153 {offsets = [0, 0], sizes = [16, 32], strides = [1, 1]} : vector<32x32xf32> to vector<16x32xf32>
    %163 = tpu.transpose %162, [1, 0] : vector<16x32xf32> -> vector<32x16xf32>
    %164 = vector.extract_strided_slice %161 {offsets = [0, 0], sizes = [8, 8], strides = [1, 1]} : vector<8x32xf32> to vector<8x8xf32>
    %165 = vector.extract_strided_slice %163 {offsets = [0, 0], sizes = [8, 16], strides = [1, 1]} : vector<32x16xf32> to vector<8x16xf32>
    %cst_76 = arith.constant dense<0.000000e+00> : vector<8x16xf32>
    %166 = tpu.matmul %164, %165, %cst_76 {dimension_numbers = #tpu.dot_dimension_numbers<[1], [0], [0], [1], [0, 0, 1, 1], [], []>} : vector<8x8xf32>, vector<8x16xf32>, vector<8x16xf32> -> vector<8x16xf32>
    %167 = vector.extract_strided_slice %161 {offsets = [0, 8], sizes = [8, 8], strides = [1, 1]} : vector<8x32xf32> to vector<8x8xf32>
    %168 = vector.extract_strided_slice %163 {offsets = [8, 0], sizes = [8, 16], strides = [1, 1]} : vector<32x16xf32> to vector<8x16xf32>
    %cst_77 = arith.constant dense<0.000000e+00> : vector<8x16xf32>
    %169 = tpu.matmul %167, %168, %cst_77 {dimension_numbers = #tpu.dot_dimension_numbers<[1], [0], [0], [1], [0, 0, 1, 1], [], []>} : vector<8x8xf32>, vector<8x16xf32>, vector<8x16xf32> -> vector<8x16xf32>
    %170 = vector.extract_strided_slice %161 {offsets = [0, 16], sizes = [8, 8], strides = [1, 1]} : vector<8x32xf32> to vector<8x8xf32>
    %171 = vector.extract_strided_slice %163 {offsets = [16, 0], sizes = [8, 16], strides = [1, 1]} : vector<32x16xf32> to vector<8x16xf32>
    %cst_78 = arith.constant dense<0.000000e+00> : vector<8x16xf32>
    %172 = tpu.matmul %170, %171, %cst_78 {dimension_numbers = #tpu.dot_dimension_numbers<[1], [0], [0], [1], [0, 0, 1, 1], [], []>} : vector<8x8xf32>, vector<8x16xf32>, vector<8x16xf32> -> vector<8x16xf32>
    %173 = vector.extract_strided_slice %161 {offsets = [0, 24], sizes = [8, 8], strides = [1, 1]} : vector<8x32xf32> to vector<8x8xf32>
    %174 = vector.extract_strided_slice %163 {offsets = [24, 0], sizes = [8, 16], strides = [1, 1]} : vector<32x16xf32> to vector<8x16xf32>
    %cst_79 = arith.constant dense<0.000000e+00> : vector<8x16xf32>
    %175 = tpu.matmul %173, %174, %cst_79 {dimension_numbers = #tpu.dot_dimension_numbers<[1], [0], [0], [1], [0, 0, 1, 1], [], []>} : vector<8x8xf32>, vector<8x16xf32>, vector<8x16xf32> -> vector<8x16xf32>
    %176 = vector.extract_strided_slice %148 {offsets = [8, 0], sizes = [8, 32], strides = [1, 1]} : vector<16x32xf32> to vector<8x32xf32>
    %177 = vector.extract_strided_slice %153 {offsets = [16, 0], sizes = [16, 32], strides = [1, 1]} : vector<32x32xf32> to vector<16x32xf32>
    %178 = tpu.transpose %177, [1, 0] : vector<16x32xf32> -> vector<32x16xf32>
    %179 = vector.extract_strided_slice %176 {offsets = [0, 0], sizes = [8, 8], strides = [1, 1]} : vector<8x32xf32> to vector<8x8xf32>
    %180 = vector.extract_strided_slice %178 {offsets = [0, 0], sizes = [8, 16], strides = [1, 1]} : vector<32x16xf32> to vector<8x16xf32>
    %cst_80 = arith.constant dense<0.000000e+00> : vector<8x16xf32>
    %181 = tpu.matmul %179, %180, %cst_80 {dimension_numbers = #tpu.dot_dimension_numbers<[1], [0], [0], [1], [0, 0, 1, 1], [], []>} : vector<8x8xf32>, vector<8x16xf32>, vector<8x16xf32> -> vector<8x16xf32>
    %182 = vector.extract_strided_slice %176 {offsets = [0, 8], sizes = [8, 8], strides = [1, 1]} : vector<8x32xf32> to vector<8x8xf32>
    %183 = vector.extract_strided_slice %178 {offsets = [8, 0], sizes = [8, 16], strides = [1, 1]} : vector<32x16xf32> to vector<8x16xf32>
    %cst_81 = arith.constant dense<0.000000e+00> : vector<8x16xf32>
    %184 = tpu.matmul %182, %183, %cst_81 {dimension_numbers = #tpu.dot_dimension_numbers<[1], [0], [0], [1], [0, 0, 1, 1], [], []>} : vector<8x8xf32>, vector<8x16xf32>, vector<8x16xf32> -> vector<8x16xf32>
    %185 = vector.extract_strided_slice %176 {offsets = [0, 16], sizes = [8, 8], strides = [1, 1]} : vector<8x32xf32> to vector<8x8xf32>
    %186 = vector.extract_strided_slice %178 {offsets = [16, 0], sizes = [8, 16], strides = [1, 1]} : vector<32x16xf32> to vector<8x16xf32>
    %cst_82 = arith.constant dense<0.000000e+00> : vector<8x16xf32>
    %187 = tpu.matmul %185, %186, %cst_82 {dimension_numbers = #tpu.dot_dimension_numbers<[1], [0], [0], [1], [0, 0, 1, 1], [], []>} : vector<8x8xf32>, vector<8x16xf32>, vector<8x16xf32> -> vector<8x16xf32>
    %188 = vector.extract_strided_slice %176 {offsets = [0, 24], sizes = [8, 8], strides = [1, 1]} : vector<8x32xf32> to vector<8x8xf32>
    %189 = vector.extract_strided_slice %178 {offsets = [24, 0], sizes = [8, 16], strides = [1, 1]} : vector<32x16xf32> to vector<8x16xf32>
    %cst_83 = arith.constant dense<0.000000e+00> : vector<8x16xf32>
    %190 = tpu.matmul %188, %189, %cst_83 {dimension_numbers = #tpu.dot_dimension_numbers<[1], [0], [0], [1], [0, 0, 1, 1], [], []>} : vector<8x8xf32>, vector<8x16xf32>, vector<8x16xf32> -> vector<8x16xf32>
    %191 = tpu.concatenate %166, %169, %172, %175, %181, %184, %187, %190 in 0 : vector<8x16xf32>, vector<8x16xf32>, vector<8x16xf32>, vector<8x16xf32>, vector<8x16xf32>, vector<8x16xf32>, vector<8x16xf32>, vector<8x16xf32> -> vector<64x16xf32>
    %cst_84 = arith.constant 0.353553385 : f32
    %192 = vector.broadcast %cst_84 : f32 to vector<64x16xf32>
    %193 = arith.mulf %191, %192 : vector<64x16xf32>
    %cst_85 = arith.constant dense<0xFF800000> : vector<64xf32>
    %194 = vector.multi_reduction <maximumf>, %193, %cst_85 [1] : vector<64x16xf32> to vector<64xf32>
    %195 = vector.shape_cast %194 : vector<64xf32> to vector<64x1xf32>
    %196 = vector.broadcast %195 : vector<64x1xf32> to vector<64x16xf32>
    %197 = arith.subf %193, %196 : vector<64x16xf32>
    %198 = math.exp %197 : vector<64x16xf32>
    %cst_86 = arith.constant dense<0.000000e+00> : vector<64xf32>
    %199 = vector.multi_reduction <add>, %198, %cst_86 [1] : vector<64x16xf32> to vector<64xf32>
    %200 = vector.shape_cast %199 : vector<64xf32> to vector<64x1xf32>
    %201 = tpu.reciprocal %200 {approx = true} : vector<64x1xf32> -> vector<64x1xf32>
    %202 = vector.broadcast %201 : vector<64x1xf32> to vector<64x16xf32>
    %203 = arith.mulf %198, %202 : vector<64x16xf32>
    %204 = vector.extract_strided_slice %158 {offsets = [0, 0], sizes = [16, 32], strides = [1, 1]} : vector<32x32xf32> to vector<16x32xf32>
    %205 = vector.extract_strided_slice %203 {offsets = [0, 0], sizes = [8, 16], strides = [1, 1]} : vector<64x16xf32> to vector<8x16xf32>
    %206 = vector.extract_strided_slice %204 {offsets = [0, 0], sizes = [16, 8], strides = [1, 1]} : vector<16x32xf32> to vector<16x8xf32>
    %cst_87 = arith.constant dense<0.000000e+00> : vector<8x8xf32>
    %207 = tpu.matmul %205, %206, %cst_87 {dimension_numbers = #tpu.dot_dimension_numbers<[1], [0], [0], [1], [0, 0, 1, 1], [], []>} : vector<8x16xf32>, vector<16x8xf32>, vector<8x8xf32> -> vector<8x8xf32>
    %208 = vector.extract_strided_slice %159 {offsets = [0, 0], sizes = [8, 32], strides = [1, 1]} : vector<32x32xf32> to vector<8x32xf32>
    %cst_88 = arith.constant dense<0.000000e+00> : vector<8x32xf32>
    %209 = tpu.matmul %207, %208, %cst_88 {dimension_numbers = #tpu.dot_dimension_numbers<[1], [0], [0], [1], [0, 0, 1, 1], [], []>} : vector<8x8xf32>, vector<8x32xf32>, vector<8x32xf32> -> vector<8x32xf32>
    %210 = vector.extract_strided_slice %203 {offsets = [8, 0], sizes = [8, 16], strides = [1, 1]} : vector<64x16xf32> to vector<8x16xf32>
    %211 = vector.extract_strided_slice %204 {offsets = [0, 8], sizes = [16, 8], strides = [1, 1]} : vector<16x32xf32> to vector<16x8xf32>
    %cst_89 = arith.constant dense<0.000000e+00> : vector<8x8xf32>
    %212 = tpu.matmul %210, %211, %cst_89 {dimension_numbers = #tpu.dot_dimension_numbers<[1], [0], [0], [1], [0, 0, 1, 1], [], []>} : vector<8x16xf32>, vector<16x8xf32>, vector<8x8xf32> -> vector<8x8xf32>
    %213 = vector.extract_strided_slice %159 {offsets = [8, 0], sizes = [8, 32], strides = [1, 1]} : vector<32x32xf32> to vector<8x32xf32>
    %cst_90 = arith.constant dense<0.000000e+00> : vector<8x32xf32>
    %214 = tpu.matmul %212, %213, %cst_90 {dimension_numbers = #tpu.dot_dimension_numbers<[1], [0], [0], [1], [0, 0, 1, 1], [], []>} : vector<8x8xf32>, vector<8x32xf32>, vector<8x32xf32> -> vector<8x32xf32>
    %215 = arith.addf %209, %214 : vector<8x32xf32>
    %216 = vector.extract_strided_slice %203 {offsets = [16, 0], sizes = [8, 16], strides = [1, 1]} : vector<64x16xf32> to vector<8x16xf32>
    %217 = vector.extract_strided_slice %204 {offsets = [0, 16], sizes = [16, 8], strides = [1, 1]} : vector<16x32xf32> to vector<16x8xf32>
    %cst_91 = arith.constant dense<0.000000e+00> : vector<8x8xf32>
    %218 = tpu.matmul %216, %217, %cst_91 {dimension_numbers = #tpu.dot_dimension_numbers<[1], [0], [0], [1], [0, 0, 1, 1], [], []>} : vector<8x16xf32>, vector<16x8xf32>, vector<8x8xf32> -> vector<8x8xf32>
    %219 = vector.extract_strided_slice %159 {offsets = [16, 0], sizes = [8, 32], strides = [1, 1]} : vector<32x32xf32> to vector<8x32xf32>
    %cst_92 = arith.constant dense<0.000000e+00> : vector<8x32xf32>
    %220 = tpu.matmul %218, %219, %cst_92 {dimension_numbers = #tpu.dot_dimension_numbers<[1], [0], [0], [1], [0, 0, 1, 1], [], []>} : vector<8x8xf32>, vector<8x32xf32>, vector<8x32xf32> -> vector<8x32xf32>
    %221 = arith.addf %215, %220 : vector<8x32xf32>
    %222 = vector.extract_strided_slice %203 {offsets = [24, 0], sizes = [8, 16], strides = [1, 1]} : vector<64x16xf32> to vector<8x16xf32>
    %223 = vector.extract_strided_slice %204 {offsets = [0, 24], sizes = [16, 8], strides = [1, 1]} : vector<16x32xf32> to vector<16x8xf32>
    %cst_93 = arith.constant dense<0.000000e+00> : vector<8x8xf32>
    %224 = tpu.matmul %222, %223, %cst_93 {dimension_numbers = #tpu.dot_dimension_numbers<[1], [0], [0], [1], [0, 0, 1, 1], [], []>} : vector<8x16xf32>, vector<16x8xf32>, vector<8x8xf32> -> vector<8x8xf32>
    %225 = vector.extract_strided_slice %159 {offsets = [24, 0], sizes = [8, 32], strides = [1, 1]} : vector<32x32xf32> to vector<8x32xf32>
    %cst_94 = arith.constant dense<0.000000e+00> : vector<8x32xf32>
    %226 = tpu.matmul %224, %225, %cst_94 {dimension_numbers = #tpu.dot_dimension_numbers<[1], [0], [0], [1], [0, 0, 1, 1], [], []>} : vector<8x8xf32>, vector<8x32xf32>, vector<8x32xf32> -> vector<8x32xf32>
    %227 = arith.addf %221, %226 : vector<8x32xf32>
    %228 = vector.extract_strided_slice %158 {offsets = [16, 0], sizes = [16, 32], strides = [1, 1]} : vector<32x32xf32> to vector<16x32xf32>
    %229 = vector.extract_strided_slice %203 {offsets = [32, 0], sizes = [8, 16], strides = [1, 1]} : vector<64x16xf32> to vector<8x16xf32>
    %230 = vector.extract_strided_slice %228 {offsets = [0, 0], sizes = [16, 8], strides = [1, 1]} : vector<16x32xf32> to vector<16x8xf32>
    %cst_95 = arith.constant dense<0.000000e+00> : vector<8x8xf32>
    %231 = tpu.matmul %229, %230, %cst_95 {dimension_numbers = #tpu.dot_dimension_numbers<[1], [0], [0], [1], [0, 0, 1, 1], [], []>} : vector<8x16xf32>, vector<16x8xf32>, vector<8x8xf32> -> vector<8x8xf32>
    %232 = vector.extract_strided_slice %159 {offsets = [0, 0], sizes = [8, 32], strides = [1, 1]} : vector<32x32xf32> to vector<8x32xf32>
    %cst_96 = arith.constant dense<0.000000e+00> : vector<8x32xf32>
    %233 = tpu.matmul %231, %232, %cst_96 {dimension_numbers = #tpu.dot_dimension_numbers<[1], [0], [0], [1], [0, 0, 1, 1], [], []>} : vector<8x8xf32>, vector<8x32xf32>, vector<8x32xf32> -> vector<8x32xf32>
    %234 = vector.extract_strided_slice %203 {offsets = [40, 0], sizes = [8, 16], strides = [1, 1]} : vector<64x16xf32> to vector<8x16xf32>
    %235 = vector.extract_strided_slice %228 {offsets = [0, 8], sizes = [16, 8], strides = [1, 1]} : vector<16x32xf32> to vector<16x8xf32>
    %cst_97 = arith.constant dense<0.000000e+00> : vector<8x8xf32>
    %236 = tpu.matmul %234, %235, %cst_97 {dimension_numbers = #tpu.dot_dimension_numbers<[1], [0], [0], [1], [0, 0, 1, 1], [], []>} : vector<8x16xf32>, vector<16x8xf32>, vector<8x8xf32> -> vector<8x8xf32>
    %237 = vector.extract_strided_slice %159 {offsets = [8, 0], sizes = [8, 32], strides = [1, 1]} : vector<32x32xf32> to vector<8x32xf32>
    %cst_98 = arith.constant dense<0.000000e+00> : vector<8x32xf32>
    %238 = tpu.matmul %236, %237, %cst_98 {dimension_numbers = #tpu.dot_dimension_numbers<[1], [0], [0], [1], [0, 0, 1, 1], [], []>} : vector<8x8xf32>, vector<8x32xf32>, vector<8x32xf32> -> vector<8x32xf32>
    %239 = arith.addf %233, %238 : vector<8x32xf32>
    %240 = vector.extract_strided_slice %203 {offsets = [48, 0], sizes = [8, 16], strides = [1, 1]} : vector<64x16xf32> to vector<8x16xf32>
    %241 = vector.extract_strided_slice %228 {offsets = [0, 16], sizes = [16, 8], strides = [1, 1]} : vector<16x32xf32> to vector<16x8xf32>
    %cst_99 = arith.constant dense<0.000000e+00> : vector<8x8xf32>
    %242 = tpu.matmul %240, %241, %cst_99 {dimension_numbers = #tpu.dot_dimension_numbers<[1], [0], [0], [1], [0, 0, 1, 1], [], []>} : vector<8x16xf32>, vector<16x8xf32>, vector<8x8xf32> -> vector<8x8xf32>
    %243 = vector.extract_strided_slice %159 {offsets = [16, 0], sizes = [8, 32], strides = [1, 1]} : vector<32x32xf32> to vector<8x32xf32>
    %cst_100 = arith.constant dense<0.000000e+00> : vector<8x32xf32>
    %244 = tpu.matmul %242, %243, %cst_100 {dimension_numbers = #tpu.dot_dimension_numbers<[1], [0], [0], [1], [0, 0, 1, 1], [], []>} : vector<8x8xf32>, vector<8x32xf32>, vector<8x32xf32> -> vector<8x32xf32>
    %245 = arith.addf %239, %244 : vector<8x32xf32>
    %246 = vector.extract_strided_slice %203 {offsets = [56, 0], sizes = [8, 16], strides = [1, 1]} : vector<64x16xf32> to vector<8x16xf32>
    %247 = vector.extract_strided_slice %228 {offsets = [0, 24], sizes = [16, 8], strides = [1, 1]} : vector<16x32xf32> to vector<16x8xf32>
    %cst_101 = arith.constant dense<0.000000e+00> : vector<8x8xf32>
    %248 = tpu.matmul %246, %247, %cst_101 {dimension_numbers = #tpu.dot_dimension_numbers<[1], [0], [0], [1], [0, 0, 1, 1], [], []>} : vector<8x16xf32>, vector<16x8xf32>, vector<8x8xf32> -> vector<8x8xf32>
    %249 = vector.extract_strided_slice %159 {offsets = [24, 0], sizes = [8, 32], strides = [1, 1]} : vector<32x32xf32> to vector<8x32xf32>
    %cst_102 = arith.constant dense<0.000000e+00> : vector<8x32xf32>
    %250 = tpu.matmul %248, %249, %cst_102 {dimension_numbers = #tpu.dot_dimension_numbers<[1], [0], [0], [1], [0, 0, 1, 1], [], []>} : vector<8x8xf32>, vector<8x32xf32>, vector<8x32xf32> -> vector<8x32xf32>
    %251 = arith.addf %245, %250 : vector<8x32xf32>
    %252 = tpu.concatenate %227, %251 in 0 : vector<8x32xf32>, vector<8x32xf32> -> vector<16x32xf32>
    %253 = vector.broadcast %160 : vector<1x32xf32> to vector<16x32xf32>
    %254 = arith.addf %252, %253 : vector<16x32xf32>
    %255 = arith.addf %143, %254 : vector<16x32xf32>
    %c0_103 = arith.constant 0 : index
    %c0_104 = arith.constant 0 : index
    %256 = vector.load %arg24[%c0_103, %c0_104] : memref<1x32xf32, #tpu.memory_space<vmem>>, vector<1x32xf32>
    %c0_105 = arith.constant 0 : index
    %c0_106 = arith.constant 0 : index
    %257 = vector.load %arg25[%c0_105, %c0_106] : memref<1x32xf32, #tpu.memory_space<vmem>>, vector<1x32xf32>
    %cst_107 = arith.constant dense<0.000000e+00> : vector<16xf32>
    %258 = vector.multi_reduction <add>, %255, %cst_107 [1] : vector<16x32xf32> to vector<16xf32>
    %259 = vector.shape_cast %258 : vector<16xf32> to vector<16x1xf32>
    %cst_108 = arith.constant 3.200000e+01 : f32
    %260 = vector.broadcast %cst_108 : f32 to vector<16x1xf32>
    %261 = arith.divf %259, %260 : vector<16x1xf32>
    %262 = vector.broadcast %261 : vector<16x1xf32> to vector<16x32xf32>
    %263 = arith.subf %255, %262 : vector<16x32xf32>
    %264 = arith.mulf %263, %263 : vector<16x32xf32>
    %cst_109 = arith.constant dense<0.000000e+00> : vector<16xf32>
    %265 = vector.multi_reduction <add>, %264, %cst_109 [1] : vector<16x32xf32> to vector<16xf32>
    %266 = vector.shape_cast %265 : vector<16xf32> to vector<16x1xf32>
    %cst_110 = arith.constant 3.200000e+01 : f32
    %267 = vector.broadcast %cst_110 : f32 to vector<16x1xf32>
    %268 = arith.divf %266, %267 : vector<16x1xf32>
    %269 = vector.broadcast %261 : vector<16x1xf32> to vector<16x32xf32>
    %270 = arith.subf %255, %269 : vector<16x32xf32>
    %cst_111 = arith.constant 9.99999974E-6 : f32
    %271 = vector.broadcast %cst_111 : f32 to vector<16x1xf32>
    %272 = arith.addf %268, %271 : vector<16x1xf32>
    %273 = math.rsqrt %272 : vector<16x1xf32>
    %274 = vector.broadcast %273 : vector<16x1xf32> to vector<16x32xf32>
    %275 = arith.mulf %270, %274 : vector<16x32xf32>
    %276 = vector.broadcast %256 : vector<1x32xf32> to vector<16x32xf32>
    %277 = arith.mulf %275, %276 : vector<16x32xf32>
    %278 = vector.broadcast %257 : vector<1x32xf32> to vector<16x32xf32>
    %279 = arith.addf %277, %278 : vector<16x32xf32>
    %c0_112 = arith.constant 0 : index
    %c0_113 = arith.constant 0 : index
    %280 = vector.load %arg18[%c0_112, %c0_113] : memref<32x256xf32, #tpu.memory_space<vmem>>, vector<32x256xf32>
    %cst_114 = arith.constant dense<0.000000e+00> : vector<16x256xf32>
    %281 = tpu.matmul %279, %280, %cst_114 {dimension_numbers = #tpu.dot_dimension_numbers<[1], [0], [0], [1], [0, 0, 1, 1], [], []>} : vector<16x32xf32>, vector<32x256xf32>, vector<16x256xf32> -> vector<16x256xf32>
    %c0_115 = arith.constant 0 : index
    %c0_116 = arith.constant 0 : index
    %282 = vector.load %arg19[%c0_115, %c0_116] : memref<1x256xf32, #tpu.memory_space<vmem>>, vector<1x256xf32>
    %283 = vector.broadcast %282 : vector<1x256xf32> to vector<16x256xf32>
    %284 = arith.addf %281, %283 : vector<16x256xf32>
    %cst_117 = arith.constant 0.000000e+00 : f32
    %285 = vector.broadcast %cst_117 : f32 to vector<16x256xf32>
    %286 = arith.maximumf %284, %285 : vector<16x256xf32>
    %c0_118 = arith.constant 0 : index
    %c0_119 = arith.constant 0 : index
    %287 = vector.load %arg20[%c0_118, %c0_119] : memref<256x64xf32, #tpu.memory_space<vmem>>, vector<256x64xf32>
    %cst_120 = arith.constant dense<0.000000e+00> : vector<16x64xf32>
    %288 = tpu.matmul %286, %287, %cst_120 {dimension_numbers = #tpu.dot_dimension_numbers<[1], [0], [0], [1], [0, 0, 1, 1], [], []>} : vector<16x256xf32>, vector<256x64xf32>, vector<16x64xf32> -> vector<16x64xf32>
    %c0_121 = arith.constant 0 : index
    %c0_122 = arith.constant 0 : index
    %289 = vector.load %arg21[%c0_121, %c0_122] : memref<1x64xf32, #tpu.memory_space<vmem>>, vector<1x64xf32>
    %290 = vector.broadcast %289 : vector<1x64xf32> to vector<16x64xf32>
    %291 = arith.addf %288, %290 : vector<16x64xf32>
    %292 = vector.extract_strided_slice %291 {offsets = [0, 0], sizes = [8, 64], strides = [1, 1]} : vector<16x64xf32> to vector<8x64xf32>
    %293 = vector.extract_strided_slice %291 {offsets = [8, 0], sizes = [8, 64], strides = [1, 1]} : vector<16x64xf32> to vector<8x64xf32>
    %294 = tpu.concatenate %292, %293 in 1 : vector<8x64xf32>, vector<8x64xf32> -> vector<8x128xf32>
    %c0_123 = arith.constant 0 : index
    %c0_124 = arith.constant 0 : index
    %295 = vector.load %arg26[%c0_123, %c0_124] : memref<8x128xf32, #tpu.memory_space<vmem>>, vector<8x128xf32>
    tpu.vector_store %arg26[%c0_123, %c0_124], %294 {strides = array<i32>} : memref<8x128xf32, #tpu.memory_space<vmem>>, vector<8x128xf32>,
    return
  }
}

</mosaic_0001>

<bundles_post_ra>
// kernel: tpu_custom_call.1
= control target key start
LH: loop header
LB: loop body
LE: loop exit
PB: predicated region body
PF: predicated region fallthrough
CT: control target
= control target key end

     0   :  { %s6528_s0 = inlined_call_operand.vmem [shape: f32[8,64], index: 0, kind: input, shape index: {}]   ;;  %s6529_s1 = inlined_call_operand.vmem [shape: f32[16,64], index: 1, kind: input, shape index: {}]   ;;  %s6530_s2 = inlined_call_operand.vmem [shape: f32[32,32], index: 2, kind: input, shape index: {}]   ;;  %s6531_s3 = inlined_call_operand.vmem [shape: f32[32,32], index: 3, kind: input, shape index: {}]   ;;  %s6532_s4 = inlined_call_operand.vmem [shape: f32[32,32], index: 4, kind: input, shape index: {}]   ;;  %s6533_s5 = inlined_call_operand.vmem [shape: f32[1,32], index: 5, kind: input, shape index: {}]   ;;  %s6534_s6 = inlined_call_operand.vmem [shape: f32[1,32], index: 6, kind: input, shape index: {}]   ;;  %s6535_s7 = inlined_call_operand.vmem [shape: f32[1,32], index: 7, kind: input, shape index: {}]   ;;  %s6536_s8 = inlined_call_operand.vmem [shape: f32[32,32], index: 8, kind: input, shape index: {}]   ;;  %s6537_s9 = inlined_call_operand.vmem [shape: f32[1,32], index: 9, kind: input, shape index: {}]   ;;  %s6538_s10 = inlined_call_operand.vmem [shape: f32[32,32], index: 10, kind: input, shape index: {}]   ;;  %s6539_s11 = inlined_call_operand.vmem [shape: f32[32,32], index: 11, kind: input, shape index: {}]   ;;  %s6540_s12 = inlined_call_operand.vmem [shape: f32[32,32], index: 12, kind: input, shape index: {}]   ;;  %s6541_s13 = inlined_call_operand.vmem [shape: f32[1,32], index: 13, kind: input, shape index: {}]   ;;  %s6542_s14 = inlined_call_operand.vmem [shape: f32[1,32], index: 14, kind: input, shape index: {}]   ;;  %s6543_s15 = inlined_call_operand.vmem [shape: f32[1,32], index: 15, kind: input, shape index: {}]   ;;  %s6544_s16 = inlined_call_operand.vmem [shape: f32[32,32], index: 16, kind: input, shape index: {}]   ;;  %s6545_s17 = inlined_call_operand.vmem [shape: f32[1,32], index: 17, kind: input, shape index: {}]   ;;  %s6546_s18 = inlined_call_operand.vmem [shape: f32[32,256], index: 18, kind: input, shape index: {}]   ;;  %s6547_s19 = inlined_call_operand.vmem [shape: f32[1,256], index: 19, kind: input, shape index: {}]   ;;  %s6548_s20 = inlined_call_operand.vmem [shape: f32[256,64], index: 20, kind: input, shape index: {}]   ;;  %s6549_s21 = inlined_call_operand.vmem [shape: f32[1,64], index: 21, kind: input, shape index: {}]   ;;  %s6550_s22 = inlined_call_operand.vmem [shape: f32[1,32], index: 22, kind: input, shape index: {}]   ;;  %s6551_s23 = inlined_call_operand.vmem [shape: f32[1,32], index: 23, kind: input, shape index: {}]   ;;  %s6552_s24 = inlined_call_operand.vmem [shape: f32[1,32], index: 24, kind: input, shape index: {}]   ;;  %s6553_s25 = inlined_call_operand.vmem [shape: f32[1,32], index: 25, kind: input, shape index: {}]   ;;  %s6554_s26 = inlined_call_operand.hbm [shape: f32[8,128], index: 26, kind: output, shape index: {}]  }
   0x1   :  { %6561 = sst [smem:[#allocation5_spill]] %s6528_s0 }
   0x2   :  { %6562 = sst [smem:[#allocation6_spill]] %s6529_s1 }
   0x3   :  { %6563 = sst [smem:[#allocation7_spill]] %s6530_s2 }
   0x4   :  { %6564 = sst [smem:[#allocation8_spill]] %s6531_s3 }
   0x5   :  { %6565 = sst [smem:[#allocation9_spill]] %s6532_s4 }
   0x6   :  { %6566 = sst [smem:[#allocation10_spill]] %s6533_s5 }
   0x7   :  { %6567 = sst [smem:[#allocation11_spill]] %s6534_s6 }
   0x8   :  { %6568 = sst [smem:[#allocation12_spill]] %s6535_s7 }
   0x9   :  { %6569 = sst [smem:[#allocation13_spill]] %s6536_s8 }
   0xa   :  { %6570 = sst [smem:[#allocation14_spill]] %s6537_s9 }
   0xb   :  { %6571 = sst [smem:[#allocation15_spill]] %s6538_s10 }
   0xc   :  { %s6572_s7 = sld [smem:[#allocation5_spill]]  ;;  %vm108_vm0 = vcmask 261120   ;;  %s5620_s9 = smov 96  }
   0xd   :  { %s6573_s4 = sld [smem:[#allocation7_spill]] }
  0x12   :  { %v5766_v0 = vld [vmem:[%s6572_s7] sm:$0xff] }
  0x13   :  { %v100_v1 = vld [vmem:[%s6573_s4 + $0x18] sm:$0xff]  ;;  %v99_v2 = vld [vmem:[%s6573_s4 + $0x10] sm:$0xff]  ;;  %88 = vrot.lane.b32.xlu0 %v5766_v0, %s5620_s9  ;;  %v98_v3 = vld [vmem:[%s6573_s4 + $0x8] sm:$0xff]  ;;  %5182 = vmatprep.mubr.msk.f32.mxu0 %vm108_vm0, %v5766_v0 }
  0x14   :  { %5174 = vmatprep.subr.mxu0 %v100_v1  ;;  %v97_v4 = vld [vmem:[%s6573_s4] sm:$0xff] }
  0x15   :  { %5175 = vmatpush3.msra.mxu0 %v100_v1 }
  0x16   :  { %5176 = vmatprep.subr.mxu0 %v99_v2 }
  0x17   :  { %5177 = vmatpush3.msra.mxu0 %v99_v2 }
  0x18   :  { %31 = vsyncpa [#allocation3], 0  ;;  %5178 = vmatprep.subr.mxu0 %v98_v3  ;;  %s6574_s27 = sld [smem:[#allocation8_spill]]  ;;  %v5621_v14 = vmov 0.0   ;;  %vm5622_vm1 = vmmov 0   ;;  %s5623_s4 = smov 120  }
  0x19   :  { %5179 = vmatpush3.msra.mxu0 %v98_v3  ;;  %s6575_s2 = sld [smem:[#allocation9_spill]]  ;;  %5212 = vmatprep.subr.mxu1 %v5621_v14  ;;  %vm365_vm2 = vcmask 64512   ;;  %s5625_s1 = smov 104   ;;  %vm3284_vm3 = vcmask 130048   ;;  %vm4864_vm4 = vcmask 523264  }
  0x1a   :  { %5180 = vmatprep.subr.mxu0 %v97_v4  ;;  %5214 = vmatprep.mubr.msk.f32.mxu1 %vm5622_vm1, %v5621_v14  ;;  %s6576_s8 = sld [smem:[#allocation10_spill]]  ;;  %s5626_s28 = smov 64  }
  0x1b   :  { %5181 = vmatpush3.msra.mxu0 %v97_v4  ;;  %s6577_s30 = sld [smem:[#allocation11_spill]] }
  0x1c   :  { %s6578_s6 = sld [smem:[#allocation12_spill]] }
  0x1d   :  { %s6579_s7 = sld [smem:[#allocation13_spill]] }
  0x1e   :  { %v191_v5 = vld [vmem:[%s6574_s27 + $0x18] sm:$0xff]  ;;  %v190_v7 = vld [vmem:[%s6574_s27 + $0x10] sm:$0xff]  ;;  %v189_v8 = vld [vmem:[%s6574_s27 + $0x8] sm:$0xff] }
  0x1f   :  { %5185 = vmatprep.subr.mxu0 %v191_v5  ;;  %v188_v9 = vld [vmem:[%s6574_s27] sm:$0xff]  ;;  %v277_v10 = vld [vmem:[%s6575_s2 + $0x18] sm:$0xff]  ;;  %v276_v11 = vld [vmem:[%s6575_s2 + $0x10] sm:$0xff]  ;;  %s6580_s27 = sld [smem:[#allocation14_spill]] }
  0x20   :  { %v275_v12 = vld [vmem:[%s6575_s2 + $0x8] sm:$0xff]  ;;  %v274_v13 = vld [vmem:[%s6575_s2] sm:$0xff]  ;;  %s5624_s2 = smov 112  }
  0x21   :  { %v4881_v15 = vld [vmem:[%s6576_s8] ss:$0 sm:$0xff]  ;;  %s5627_s8 = smov [#allocation2]  }
  0x22   :  { %v4884_v21 = vld [vmem:[%s6577_s30] ss:$0 sm:$0xff]  ;;  %s6582_s30 = sld [smem:[#allocation15_spill]]  ;;  %s4873_s29 = sshll.u32 %s5627_s8, 4  ;;  %s4874_s29 = int_to_ptr.vmem [resolvable:$true] %s4873_s29 }
  0x23   :  { %v4887_v24 = vld [vmem:[%s6578_s6] ss:$0 sm:$0xff]  ;;  %s5598_s0 = scalar_lea.vmem %s4874_s29, 128  ;;  %p5603_p1 = scmp.lt.s32.totalorder %s4874_s29, %s4874_s29 }
  0x24   :  { %p5599_p0 = scmp.ne.s32.totalorder %s4874_s29, %s5598_s0  ;;  %p5604_p2 = scmp.lt.s32.totalorder %s5598_s0, %s5598_s0 }
  0x26   :  { %p5605_p3 = por %p5604_p2, %p5603_p1 }
  0x28   :  { %p5606_p4 = pnand %p5605_p3, %p5599_p0 }
  0x85   :  { %v5787_v6 = vpop.permute.xlu0 %88 }
  0x86   :  { %5183 = vmatmul.mubr.msk.f32.vlgmr.msra.gmra.mxu0 %vm108_vm0, %v5787_v6 }
  0x87   :  { %5186 = vmatpush3.msra.mxu0 %v191_v5  ;;  %5193 = vmatprep.mubr.msk.f32.mxu0 %vm108_vm0, %v5766_v0 }
  0x88   :  { %5187 = vmatprep.subr.mxu0 %v190_v7 }
  0x89   :  { %5188 = vmatpush3.msra.mxu0 %v190_v7 }
  0x8a   :  { %5189 = vmatprep.subr.mxu0 %v189_v8 }
  0x8b   :  { %5190 = vmatpush3.msra.mxu0 %v189_v8 }
  0x8c   :  { %5191 = vmatprep.subr.mxu0 %v188_v9 }
  0x8d   :  { %5192 = vmatpush3.msra.mxu0 %v188_v9 }
  0x8e   :  { %5194 = vmatmul.mubr.msk.f32.vlgmr.msra.gmra.mxu0 %vm108_vm0, %v5787_v6  ;;  %5196 = vmatprep.subr.mxu0 %v277_v10 }
  0x8f   :  { %5197 = vmatpush3.msra.mxu0 %v277_v10  ;;  %5204 = vmatprep.mubr.msk.f32.mxu0 %vm108_vm0, %v5766_v0 }
  0x90   :  { %5198 = vmatprep.subr.mxu0 %v276_v11 }
  0x91   :  { %5199 = vmatpush3.msra.mxu0 %v276_v11 }
  0x92   :  { %5200 = vmatprep.subr.mxu0 %v275_v12 }
  0x93   :  { %5201 = vmatpush3.msra.mxu0 %v275_v12 }
  0x94   :  { %5202 = vmatprep.subr.mxu0 %v274_v13 }
  0x95   :  { %5203 = vmatpush3.msra.mxu0 %v274_v13 }
  0x96   :  { %5205 = vmatmul.mubr.msk.f32.vlgmr.msra.gmra.mxu0 %vm108_vm0, %v5787_v6  ;;  %5207 = vmatprep.subr.mxu0 %v5621_v14 }
  0x97   :  { %5209 = vmatprep.mubr.msk.f32.mxu0 %vm5622_vm1, %v5621_v14 }
 0x146   :  { %v5184_v16 = vpop.f32.mrf.mxu0 }
 0x147   :  { %v5829_v17 = vadd.f32 %v5184_v16, %v4881_v15 }
 0x148   :  { %v179_v18 = vpop.f32.mrf.mxu0 }
 0x149   :  { %v180_v19 = vadd.f32 %v4881_v15, %v179_v18 }
 0x14b   :  { %442 = vrot.lane.b32.xlu1 %v180_v19, %s5623_s4 }
 0x14e   :  { %v5195_v20 = vpop.f32.mrf.mxu0 }
 0x14f   :  { %v271_v27 = vadd.f32 %v5195_v20, %v4884_v21 }
 0x150   :  { %v265_v22 = vpop.f32.mrf.mxu0 }
 0x151   :  { %v266_v23 = vadd.f32 %v4884_v21, %v265_v22 }
 0x153   :  { %444 = vrot.lane.b32.xlu0 %v266_v23, %s5623_s4  ;;  %5208 = vmatpush3.xpose.msk.msra.mxu0 %vm365_vm2, %v266_v23 }
 0x154   :  { %522 = vrot.lane.b32.xlu1 %v266_v23, %s5624_s2  ;;  %5217 = vmatprep.subr.mxu0 %v5621_v14 }
 0x156   :  { %v5206_v25 = vpop.f32.mrf.mxu0  ;;  %5210 = vmatmul.mubr.msk.f32.vlgmr.msra.gmra.mxu0 %vm365_vm2, %v180_v19 }
 0x157   :  { %v5843_v26 = vadd.f32 %v5206_v25, %v4887_v24  ;;  %520 = vrot.lane.b32.xlu0 %v180_v19, %s5624_s2  ;;  %5219 = vmatprep.mubr.msk.f32.mxu0 %vm5622_vm1, %v5621_v14 }
 0x158   :  { %600 = vrot.lane.b32.xlu1 %v266_v23, %s5625_s1  ;;  %v351_v35 = vpop.f32.mrf.mxu0 }
 0x159   :  { %v5880_v48 = vadd.f32 %v4887_v24, %v351_v35 }
 0x15b   :  { %598 = vrot.lane.b32.xlu0 %v180_v19, %s5625_s1 }
 0x15f   :  { %754 = vrot.lane.b32.xlu0 %v271_v27, %s5623_s4 }
 0x1bd   :  { %v443_v28 = vpop.permute.xlu1 %442 }
 0x1c5   :  { %v445_v29 = vpop.permute.xlu0 %444 }
 0x1c6   :  { %v523_v30 = vpop.permute.xlu1 %522  ;;  %5213 = vmatpush3.xpose.msk.msra.mxu1 %vm365_vm2, %v445_v29 }
 0x1c7   :  { %5218 = vmatpush3.xpose.msk.msra.mxu0 %vm365_vm2, %v523_v30  ;;  %5222 = vmatprep.subr.mxu1 %v5621_v14 }
 0x1c8   :  { %5227 = vmatprep.subr.mxu0 %v5621_v14 }
 0x1c9   :  { %v521_v31 = vpop.permute.xlu0 %520  ;;  %5215 = vmatmul.mubr.msk.f32.vlgmr.msra.gmra.mxu1 %vm365_vm2, %v443_v28 }
 0x1ca   :  { %v601_v32 = vpop.permute.xlu1 %600  ;;  %5220 = vmatmul.mubr.msk.f32.vlgmr.msra.gmra.mxu0 %vm365_vm2, %v521_v31  ;;  %5224 = vmatprep.mubr.msk.f32.mxu1 %vm5622_vm1, %v5621_v14 }
 0x1cb   :  { %5223 = vmatpush3.xpose.msk.msra.mxu1 %vm365_vm2, %v601_v32  ;;  %5228 = vmatpush3.xpose.msk.msra.mxu0 %vm365_vm2, %v271_v27 }
 0x1cc   :  { %5229 = vmatprep.mubr.msk.f32.mxu0 %vm5622_vm1, %v5621_v14  ;;  %5232 = vmatprep.subr.mxu1 %v5621_v14 }
 0x1cd   :  { %v599_v33 = vpop.permute.xlu0 %598  ;;  %5237 = vmatprep.subr.mxu0 %v5621_v14 }
 0x1ce   :  { %5225 = vmatmul.mubr.msk.f32.vlgmr.msra.gmra.mxu1 %vm365_vm2, %v599_v33  ;;  %5230 = vmatmul.mubr.msk.f32.vlgmr.msra.gmra.mxu0 %vm365_vm2, %v5829_v17 }
 0x1cf   :  { %5234 = vmatprep.mubr.msk.f32.mxu1 %vm5622_vm1, %v5621_v14  ;;  %5239 = vmatprep.mubr.msk.f32.mxu0 %vm5622_vm1, %v5621_v14 }
 0x1d1   :  { %v755_v34 = vpop.permute.xlu0 %754 }
 0x1d2   :  { %5233 = vmatpush3.xpose.msk.msra.mxu1 %vm365_vm2, %v755_v34 }
 0x1d3   :  { %5242 = vmatprep.subr.mxu1 %v5621_v14 }
 0x216   :  { %v438_v36 = vpop.f32.mrf.mxu0 }
 0x217   :  { %v986_v63 = vmul.f32 0.35355338, %v438_v36 }
 0x218   :  { %v5211_v37 = vpop.f32.mrf.mxu0 }
 0x219   :  { %v994_v2 = vsel %vm365_vm2, %v986_v63, -inf  ;;  %v5928_v37 = vld [vmem:[%s6579_s7 + $0x8] sm:$0xff] }
 0x289   :  { %v516_v38 = vpop.f32.mrf.mxu1 }
 0x28a   :  { %v987_v39 = vmul.f32 0.35355338, %v516_v38  ;;  %v594_v40 = vpop.f32.mrf.mxu0 }
 0x28b   :  { %v5216_v41 = vpop.f32.mrf.mxu1  ;;  %v988_v49 = vmul.f32 0.35355338, %v594_v40 }
 0x28c   :  { %v5221_v42 = vpop.f32.mrf.mxu0  ;;  %v997_v43 = vsel %vm365_vm2, %v987_v39, -inf }
 0x28d   :  { %998 = vmax.xlane.f32.xlu1 %v997_v43  ;;  %v1000_v50 = vsel %vm365_vm2, %v988_v49, -inf }
 0x28e   :  { %v672_v44 = vpop.f32.mrf.mxu1  ;;  %v5875_v45 = vpop.f32.mrf.mxu0 }
 0x28f   :  { %v989_v1 = vmul.f32 0.35355338, %v672_v44 }
 0x290   :  { %v5226_v46 = vpop.f32.mrf.mxu1  ;;  %v5231_v47 = vpop.f32.mrf.mxu0 }
 0x291   :  { %v1003_v3 = vsel %vm365_vm2, %v989_v1, -inf }
 0x29e   :  { %752 = vrot.lane.b32.xlu1 %v5829_v17, %s5623_s4 }
 0x2a2   :  { %910 = vrot.lane.b32.xlu1 %v271_v27, %s5625_s1 }
 0x2a6   :  { %1156 = vrot.lane.b32.xlu1 %v5880_v48, %s5623_s4 }
 0x2ca   :  { %1001 = vmax.xlane.f32.xlu1 %v1000_v50 }
 0x2db   :  { %832 = vrot.lane.b32.xlu1 %v271_v27, %s5624_s2 }
 0x316   :  { %v999_v51 = vpop.xlane.xlu1 %998 }
 0x317   :  { %v1019_v52 = vsub.f32 %v987_v39, %v999_v51  ;;  %v360_v51 = vld [vmem:[%s6579_s7] sm:$0xff] }
 0x319   :  { %v1028_v53 = vmul.f32 1.442695, %v1019_v52 }
 0x31a   :  { %v753_v54 = vpop.permute.xlu1 %752 }
 0x31b   :  { %5526 = vpow2.f32 %v1028_v53  ;;  %5235 = vmatmul.mubr.msk.f32.vlgmr.msra.gmra.mxu1 %vm365_vm2, %v753_v54 }
 0x31c   :  { %5244 = vmatprep.mubr.msk.f32.mxu1 %vm5622_vm1, %v5621_v14 }
 0x31e   :  { %v911_v55 = vpop.permute.xlu1 %910 }
 0x31f   :  { %5243 = vmatpush3.xpose.msk.msra.mxu1 %vm365_vm2, %v911_v55 }
 0x320   :  { %5252 = vmatprep.subr.mxu1 %v5621_v14 }
 0x322   :  { %v1157_v58 = vpop.permute.xlu1 %1156 }
 0x328   :  { %v5527_v56 = vpop.eup %5526 }
 0x329   :  { %v1045_v57 = vsel %vm365_vm2, %v5527_v56, 0.0 }
 0x32a   :  { %1046 = vadd.xlane.f32.xlu0 %v1045_v57 }
 0x340   :  { %908 = vrot.lane.b32.xlu0 %v5829_v17, %s5625_s1 }
 0x353   :  { %v1002_v59 = vpop.xlane.xlu1 %1001 }
 0x354   :  { %v1020_v60 = vsub.f32 %v988_v49, %v1002_v59  ;;  %v990_v49 = vmul.f32 0.35355338, %v5875_v45 }
 0x356   :  { %v1030_v61 = vmul.f32 1.442695, %v1020_v60  ;;  %v1006_v52 = vsel %vm365_vm2, %v990_v49, -inf }
 0x357   :  { %v833_v62 = vpop.permute.xlu1 %832 }
 0x358   :  { %5528 = vpow2.f32 %v1030_v61  ;;  %5238 = vmatpush3.xpose.msk.msra.mxu0 %vm365_vm2, %v833_v62 }
 0x359   :  { %5247 = vmatprep.subr.mxu0 %v5621_v14 }
 0x35f   :  { %995 = vmax.xlane.f32.xlu0 %v994_v2 }
 0x363   :  { %1004 = vmax.xlane.f32.xlu0 %v1003_v3 }
 0x365   :  { %v5898_v4 = vpop.eup %5528 }
 0x366   :  { %v1048_v5 = vsel %vm365_vm2, %v5898_v4, 0.0 }
 0x367   :  { %1049 = vadd.xlane.f32.xlu1 %v1048_v5 }
 0x378   :  { %1378 = vrot.lane.b32.xlu1 %v5880_v48, %s5624_s2 }
 0x37c   :  { %1528 = vrot.lane.b32.xlu1 %v5880_v48, %s5625_s1 }
 0x3b3   :  { %v1047_v7 = vpop.xlane.xlu0 %1046 }
 0x3b4   :  { %5530 = vrcp.f32 %v1047_v7 }
 0x3b7   :  { %v909_v8 = vpop.permute.xlu0 %908 }
 0x3b8   :  { %5245 = vmatmul.mubr.msk.f32.vlgmr.msra.gmra.mxu1 %vm365_vm2, %v909_v8 }
 0x3b9   :  { %5253 = vmatpush3.msra.mxu1 %v1157_v58  ;;  %5254 = vmatprep.mubr.msk.f32.mxu1 %vm5622_vm1, %v5621_v14  ;;  %v5961_v58 = vld [vmem:[%s6579_s7 + $0x10] sm:$0xff] }
 0x3ba   :  { %5262 = vmatprep.subr.mxu1 %v5621_v14 }
 0x3c1   :  { %v5531_v9 = vpop.eup %5530 }
 0x3c2   :  { %v1075_v10 = vmul.f32 %v5531_v9, %v5527_v56 }
 0x3c4   :  { %5255 = vmatmul.mubr.msk.f32.vlgmr.msra.gmra.mxu1 %vm365_vm2, %v1075_v10 }
 0x3c5   :  { %5264 = vmatprep.mubr.msk.f32.mxu1 %vm5622_vm1, %v5621_v14  ;;  %5263 = vmatpush3.msra.mxu1 %v360_v51 }
 0x3c6   :  { %5272 = vmatprep.subr.mxu1 %v5621_v14 }
 0x3db   :  { %v826_v11 = vpop.f32.mrf.mxu1 }
 0x3dc   :  { %v991_v25 = vmul.f32 0.35355338, %v826_v11 }
 0x3dd   :  { %v5236_v12 = vpop.f32.mrf.mxu1 }
 0x3de   :  { %v1009_v27 = vsel %vm365_vm2, %v991_v25, -inf }
 0x3e8   :  { %v996_v13 = vpop.xlane.xlu0 %995 }
 0x3e9   :  { %v1018_v15 = vsub.f32 %v986_v63, %v996_v13 }
 0x3eb   :  { %v1026_v16 = vmul.f32 1.442695, %v1018_v15 }
 0x3ec   :  { %v1005_v18 = vpop.xlane.xlu0 %1004 }
 0x3ed   :  { %5532 = vpow2.f32 %v1026_v16  ;;  %v1021_v19 = vsub.f32 %v989_v1, %v1005_v18  ;;  %v5971_v1 = vld [vmem:[%s6579_s7 + $0x18] sm:$0xff]  ;;  %s6581_s7 = sld [smem:[#allocation6_spill]] }
 0x3ef   :  { %v1032_v20 = vmul.f32 1.442695, %v1021_v19 }
 0x3f0   :  { %v1050_v33 = vpop.xlane.xlu1 %1049 }
 0x3f1   :  { %5534 = vpow2.f32 %v1032_v20 }
 0x3f4   :  { %v1379_v38 = vpop.permute.xlu1 %1378 }
 0x3f8   :  { %v1529_v42 = vpop.permute.xlu1 %1528 }
 0x3fa   :  { %v5533_v21 = vpop.eup %5532 }
 0x3fb   :  { %v1042_v22 = vsel %vm365_vm2, %v5533_v21, 0.0 }
 0x3fc   :  { %1043 = vadd.xlane.f32.xlu0 %v1042_v22 }
 0x3fe   :  { %v5535_v23 = vpop.eup %5534 }
 0x3ff   :  { %v1051_v24 = vsel %vm365_vm2, %v5535_v23, 0.0 }
 0x400   :  { %1052 = vadd.xlane.f32.xlu0 %v1051_v24 }
 0x416   :  { %830 = vrot.lane.b32.xlu0 %v5829_v17, %s5624_s2 }
 0x435   :  { %1010 = vmax.xlane.f32.xlu0 %v1009_v27 }
 0x44b   :  { %1752 = vrot.lane.b32.xlu0 %v5843_v26, %s5623_s4 }
 0x478   :  { %v982_v28 = vpop.f32.mrf.mxu1 }
 0x479   :  { %v993_v56 = vmul.f32 0.35355338, %v982_v28 }
 0x47a   :  { %v5246_v29 = vpop.f32.mrf.mxu1 }
 0x47b   :  { %v1015_v45 = vsel %vm365_vm2, %v993_v56, -inf }
 0x484   :  { %v1228_v30 = vpop.f32.mrf.mxu1 }
 0x485   :  { %v1044_v31 = vpop.xlane.xlu0 %1043 }
 0x486   :  { %5536 = vrcp.f32 %v1044_v31  ;;  %v5256_v32 = vpop.f32.mrf.mxu1 }
 0x487   :  { %5538 = vrcp.f32 %v1050_v33 }
 0x489   :  { %v1053_v34 = vpop.xlane.xlu0 %1052 }
 0x48a   :  { %5540 = vrcp.f32 %v1053_v34 }
 0x48d   :  { %v831_v35 = vpop.permute.xlu0 %830 }
 0x48e   :  { %5240 = vmatmul.mubr.msk.f32.vlgmr.msra.gmra.mxu0 %vm365_vm2, %v831_v35 }
 0x48f   :  { %5248 = vmatpush3.msra.mxu0 %v5880_v48  ;;  %5249 = vmatprep.mubr.msk.f32.mxu0 %vm5622_vm1, %v5621_v14 }
 0x490   :  { %5257 = vmatprep.subr.mxu0 %v5621_v14 }
 0x493   :  { %v5537_v17 = vpop.eup %5536 }
 0x494   :  { %v1074_v36 = vmul.f32 %v5537_v17, %v5533_v21  ;;  %v5539_v39 = vpop.eup %5538 }
 0x495   :  { %v1076_v40 = vmul.f32 %v5539_v39, %v5898_v4 }
 0x496   :  { %5250 = vmatmul.mubr.msk.f32.vlgmr.msra.gmra.mxu0 %vm365_vm2, %v1074_v36 }
 0x497   :  { %5258 = vmatpush3.msra.mxu0 %v5928_v37  ;;  %5259 = vmatprep.mubr.msk.f32.mxu0 %vm5622_vm1, %v5621_v14  ;;  %v5541_v41 = vpop.eup %5540 }
 0x498   :  { %5267 = vmatprep.subr.mxu0 %v5621_v14  ;;  %v1077_v43 = vmul.f32 %v5541_v41, %v5535_v23 }
 0x49a   :  { %5260 = vmatmul.mubr.msk.f32.vlgmr.msra.gmra.mxu0 %vm365_vm2, %v1228_v30 }
 0x49b   :  { %5268 = vmatpush3.msra.mxu0 %v1379_v38  ;;  %5269 = vmatprep.mubr.msk.f32.mxu0 %vm5622_vm1, %v5621_v14 }
 0x49c   :  { %5277 = vmatprep.subr.mxu0 %v5621_v14 }
 0x49e   :  { %5270 = vmatmul.mubr.msk.f32.vlgmr.msra.gmra.mxu0 %vm365_vm2, %v1076_v40 }
 0x49f   :  { %5278 = vmatpush3.msra.mxu0 %v1529_v42  ;;  %5279 = vmatprep.mubr.msk.f32.mxu0 %vm5622_vm1, %v5621_v14 }
 0x4a0   :  { %5287 = vmatprep.subr.mxu0 %v5621_v14 }
 0x4a2   :  { %5280 = vmatmul.mubr.msk.f32.vlgmr.msra.gmra.mxu0 %vm365_vm2, %v1077_v43 }
 0x4a3   :  { %5288 = vmatpush3.msra.mxu0 %v5843_v26  ;;  %5289 = vmatprep.mubr.msk.f32.mxu0 %vm5622_vm1, %v5621_v14 }
 0x4a4   :  { %5297 = vmatprep.subr.mxu0 %v5621_v14 }
 0x4be   :  { %v1011_v44 = vpop.xlane.xlu0 %1010 }
 0x4bf   :  { %v1023_v46 = vsub.f32 %v991_v25, %v1011_v44 }
 0x4c1   :  { %v1036_v47 = vmul.f32 1.442695, %v1023_v46 }
 0x4c2   :  { %v1753_v9 = vpop.permute.xlu0 %1752 }
 0x4c3   :  { %5542 = vpow2.f32 %v1036_v47 }
 0x4d0   :  { %v5543_v48 = vpop.eup %5542 }
 0x4d1   :  { %v1057_v50 = vsel %vm365_vm2, %v5543_v48, 0.0 }
 0x4d2   :  { %1058 = vadd.xlane.f32.xlu1 %v1057_v50 }
 0x4d6   :  { %1007 = vmax.xlane.f32.xlu1 %v1006_v52 }
 0x54e   :  { %v904_v53 = vpop.f32.mrf.mxu0 }
 0x54f   :  { %v992_v54 = vmul.f32 0.35355338, %v904_v53 }
 0x550   :  { %v5241_v55 = vpop.f32.mrf.mxu0 }
 0x551   :  { %v1012_v57 = vsel %vm365_vm2, %v992_v54, -inf }
 0x552   :  { %1013 = vmax.xlane.f32.xlu1 %v1012_v57 }
 0x556   :  { %1016 = vmax.xlane.f32.xlu1 %v1015_v45  ;;  %v1151_v59 = vpop.f32.mrf.mxu0 }
 0x557   :  { %5265 = vmatmul.mubr.msk.f32.vlgmr.msra.gmra.mxu1 %vm365_vm2, %v1151_v59 }
 0x558   :  { %v5251_v60 = vpop.f32.mrf.mxu0  ;;  %5273 = vmatpush3.msra.mxu1 %v5961_v58  ;;  %5274 = vmatprep.mubr.msk.f32.mxu1 %vm5622_vm1, %v5621_v14 }
 0x559   :  { %5282 = vmatprep.subr.mxu1 %v5621_v14 }
 0x55a   :  { %v1301_v61 = vpop.f32.mrf.mxu0 }
 0x55b   :  { %v1059_v62 = vpop.xlane.xlu1 %1058 }
 0x55c   :  { %5544 = vrcp.f32 %v1059_v62  ;;  %v5261_v63 = vpop.f32.mrf.mxu0 }
 0x55e   :  { %v1450_v2 = vpop.f32.mrf.mxu0 }
 0x55f   :  { %v1008_v3 = vpop.xlane.xlu1 %1007  ;;  %5275 = vmatmul.mubr.msk.f32.vlgmr.msra.gmra.mxu1 %vm365_vm2, %v1450_v2 }
 0x560   :  { %v1022_v4 = vsub.f32 %v990_v49, %v1008_v3  ;;  %v5271_v5 = vpop.f32.mrf.mxu0  ;;  %5283 = vmatpush3.msra.mxu1 %v5971_v1  ;;  %5284 = vmatprep.mubr.msk.f32.mxu1 %vm5622_vm1, %v5621_v14 }
 0x561   :  { %5292 = vmatprep.subr.mxu1 %v5621_v14 }
 0x562   :  { %v1034_v7 = vmul.f32 1.442695, %v1022_v4  ;;  %v1600_v8 = vpop.f32.mrf.mxu0 }
 0x563   :  { %5285 = vmatmul.mubr.msk.f32.vlgmr.msra.gmra.mxu1 %vm365_vm2, %v1600_v8 }
 0x564   :  { %5546 = vpow2.f32 %v1034_v7  ;;  %5293 = vmatpush3.msra.mxu1 %v1753_v9  ;;  %v5281_v10 = vpop.f32.mrf.mxu0  ;;  %5294 = vmatprep.mubr.msk.f32.mxu1 %vm5622_vm1, %v5621_v14 }
 0x565   :  { %5302 = vmatprep.subr.mxu1 %v5621_v14 }
 0x569   :  { %v5545_v11 = vpop.eup %5544 }
 0x56a   :  { %v1079_v12 = vmul.f32 %v5545_v11, %v5543_v48 }
 0x56c   :  { %5295 = vmatmul.mubr.msk.f32.vlgmr.msra.gmra.mxu1 %vm365_vm2, %v1079_v12 }
 0x56d   :  { %5303 = vmatpush3.msra.mxu1 %v360_v51  ;;  %5304 = vmatprep.mubr.msk.f32.mxu1 %vm5622_vm1, %v5621_v14 }
 0x56e   :  { %5312 = vmatprep.subr.mxu1 %v5621_v14 }
 0x571   :  { %v5547_v13 = vpop.eup %5546 }
 0x572   :  { %v1054_v15 = vsel %vm365_vm2, %v5547_v13, 0.0 }
 0x573   :  { %1055 = vadd.xlane.f32.xlu1 %v1054_v15 }
 0x5db   :  { %v1014_v16 = vpop.xlane.xlu1 %1013 }
 0x5dc   :  { %v1024_v18 = vsub.f32 %v992_v54, %v1014_v16 }
 0x5de   :  { %v1038_v19 = vmul.f32 1.442695, %v1024_v18 }
 0x5df   :  { %v1017_v20 = vpop.xlane.xlu1 %1016 }
 0x5e0   :  { %5548 = vpow2.f32 %v1038_v19  ;;  %v1025_v21 = vsub.f32 %v993_v56, %v1017_v20 }
 0x5e2   :  { %v1040_v22 = vmul.f32 1.442695, %v1025_v21 }
 0x5e4   :  { %5550 = vpow2.f32 %v1040_v22 }
 0x5ed   :  { %v5549_v23 = vpop.eup %5548 }
 0x5ee   :  { %v1060_v24 = vsel %vm365_vm2, %v5549_v23, 0.0 }
 0x5ef   :  { %1061 = vadd.xlane.f32.xlu1 %v1060_v24 }
 0x5f1   :  { %v5551_v25 = vpop.eup %5550 }
 0x5f2   :  { %v1063_v27 = vsel %vm365_vm2, %v5551_v25, 0.0 }
 0x5f3   :  { %1064 = vadd.xlane.f32.xlu0 %v1063_v27  ;;  %v4924_v27 = vld [vmem:[%s6551_s23] ss:$0 sm:$0xff] }
 0x5fc   :  { %v1056_v28 = vpop.xlane.xlu1 %1055 }
 0x5fd   :  { %5552 = vrcp.f32 %v1056_v28  ;;  %v2424_v28 = vld [vmem:[%s6539_s11 + $0x18] sm:$0xff] }
 0x600   :  { %1974 = vrot.lane.b32.xlu1 %v5843_v26, %s5624_s2 }
 0x604   :  { %2124 = vrot.lane.b32.xlu1 %v5843_v26, %s5625_s1  ;;  %v4922_v26 = vld [vmem:[%s6580_s27] ss:$0 sm:$0xff] }
 0x60a   :  { %v5553_v29 = vpop.eup %5552 }
 0x60b   :  { %v1078_v30 = vmul.f32 %v5553_v29, %v5547_v13 }
 0x60d   :  { %5290 = vmatmul.mubr.msk.f32.vlgmr.msra.gmra.mxu0 %vm365_vm2, %v1078_v30  ;;  %v2423_v30 = vld [vmem:[%s6539_s11 + $0x10] sm:$0xff] }
 0x60e   :  { %5298 = vmatpush3.msra.mxu0 %v5928_v37  ;;  %5299 = vmatprep.mubr.msk.f32.mxu0 %vm5622_vm1, %v5621_v14 }
 0x60f   :  { %5307 = vmatprep.subr.mxu0 %v5621_v14 }
 0x617   :  { %v1374_v31 = vpop.f32.mrf.mxu1 }
 0x618   :  { %v1375_v34 = vadd.f32 %v1374_v31, %v1301_v61 }
 0x619   :  { %v5266_v32 = vpop.f32.mrf.mxu1 }
 0x61a   :  { %v2422_v32 = vld [vmem:[%s6539_s11 + $0x8] sm:$0xff] }
 0x61f   :  { %v1523_v33 = vpop.f32.mrf.mxu1 }
 0x620   :  { %v1527_v17 = vadd.f32 %v1523_v33, %v1375_v34  ;;  %v2421_v33 = vld [vmem:[%s6539_s11] sm:$0xff] }
 0x621   :  { %v5276_v35 = vpop.f32.mrf.mxu1  ;;  %v85_v34 = vld [vmem:[%s6581_s7] sm:$0xff] }
 0x622   :  { %v86_v35 = vld [vmem:[%s6581_s7 + $0x8] sm:$0xff] }
 0x623   :  { %v1673_v36 = vpop.f32.mrf.mxu1 }
 0x624   :  { %v1677_v38 = vadd.f32 %v1673_v36, %v1527_v17  ;;  %v2332_v17 = vld [vmem:[%s6582_s30 + $0x18] sm:$0xff]  ;;  %v2330_v36 = vld [vmem:[%s6582_s30 + $0x8] sm:$0xff] }
 0x625   :  { %v5286_v39 = vpop.f32.mrf.mxu1 }
 0x626   :  { %v2280_v40 = vadd.f32 %v4922_v26, %v1677_v38  ;;  %v2329_v38 = vld [vmem:[%s6582_s30] sm:$0xff] }
 0x628   :  { %v2282_v37 = vadd.f32 %v2280_v40, %v5766_v0 }
 0x62a   :  { %v2286_v41 = vsel %vm108_vm0, %v2282_v37, 0.0 }
 0x62b   :  { %2287 = vadd.xlane.f32.xlu1 %v2286_v41 }
 0x62c   :  { %v1824_v42 = vpop.f32.mrf.mxu1 }
 0x62d   :  { %5300 = vmatmul.mubr.msk.f32.vlgmr.msra.gmra.mxu0 %vm365_vm2, %v1824_v42 }
 0x62e   :  { %v5296_v43 = vpop.f32.mrf.mxu1  ;;  %5309 = vmatprep.mubr.msk.f32.mxu0 %vm5622_vm1, %v5621_v14 }
 0x63c   :  { %95 = vrot.lane.b32.xlu1 %v86_v35, %s5620_s9 }
 0x678   :  { %v1062_v44 = vpop.xlane.xlu1 %1061 }
 0x679   :  { %5554 = vrcp.f32 %v1062_v44 }
 0x67c   :  { %v1065_v46 = vpop.xlane.xlu0 %1064  ;;  %v1975_v47 = vpop.permute.xlu1 %1974 }
 0x67d   :  { %5556 = vrcp.f32 %v1065_v46  ;;  %5308 = vmatpush3.msra.mxu0 %v1975_v47 }
 0x67e   :  { %5317 = vmatprep.subr.mxu0 %v5621_v14 }
 0x680   :  { %v2125_v49 = vpop.permute.xlu1 %2124 }
 0x686   :  { %v5555_v48 = vpop.eup %5554 }
 0x687   :  { %v1080_v0 = vmul.f32 %v5555_v48, %v5549_v23  ;;  %v6082_v48 = vld [vmem:[%s6542_s14] ss:$0 sm:$0xff] }
 0x689   :  { %5310 = vmatmul.mubr.msk.f32.vlgmr.msra.gmra.mxu0 %vm365_vm2, %v1080_v0 }
 0x68a   :  { %v5557_v50 = vpop.eup %5556  ;;  %5318 = vmatpush3.msra.mxu0 %v2125_v49  ;;  %5319 = vmatprep.mubr.msk.f32.mxu0 %vm5622_vm1, %v5621_v14 }
 0x68b   :  { %v1081_v51 = vmul.f32 %v5557_v50, %v5551_v25  ;;  %5327 = vmatprep.subr.mxu0 %v2332_v17 }
 0x68d   :  { %5320 = vmatmul.mubr.msk.f32.vlgmr.msra.gmra.mxu0 %vm365_vm2, %v1081_v51 }
 0x68e   :  { %5328 = vmatpush3.msra.mxu0 %v2332_v17 }
 0x6b4   :  { %v2288_v61 = vpop.xlane.xlu1 %2287 }
 0x6b5   :  { %v2293_v3 = vmul.f32 0.03125, %v2288_v61 }
 0x6b8   :  { %v96_v41 = vpop.permute.xlu1 %95 }
 0x6cd   :  { %v1747_v52 = vpop.f32.mrf.mxu0 }
 0x6ce   :  { %5305 = vmatmul.mubr.msk.f32.vlgmr.msra.gmra.mxu1 %vm365_vm2, %v1747_v52  ;;  %v2528_v52 = vld [vmem:[%s6540_s12 + $0x18] sm:$0xff] }
 0x6cf   :  { %v5291_v53 = vpop.f32.mrf.mxu0  ;;  %5313 = vmatpush3.msra.mxu1 %v5961_v58  ;;  %5314 = vmatprep.mubr.msk.f32.mxu1 %vm5622_vm1, %v5621_v14 }
 0x6d0   :  { %5322 = vmatprep.subr.mxu1 %v5621_v14  ;;  %v2527_v53 = vld [vmem:[%s6540_s12 + $0x10] sm:$0xff] }
 0x6ed   :  { %v1897_v54 = vpop.f32.mrf.mxu0 }
 0x6ef   :  { %v5301_v55 = vpop.f32.mrf.mxu0 }
 0x6f0   :  { %v2525_v55 = vld [vmem:[%s6540_s12] sm:$0xff] }
 0x749   :  { %v2046_v56 = vpop.f32.mrf.mxu0 }
 0x74a   :  { %5315 = vmatmul.mubr.msk.f32.vlgmr.msra.gmra.mxu1 %vm365_vm2, %v2046_v56 }
 0x74b   :  { %5323 = vmatpush3.msra.mxu1 %v5971_v1  ;;  %v5311_v57 = vpop.f32.mrf.mxu0  ;;  %5324 = vmatprep.mubr.msk.f32.mxu1 %vm5622_vm1, %v5621_v14  ;;  %v2295_v1 = vsub.f32 %v2282_v37, %v2293_v3 }
 0x74c   :  { %5338 = vmatprep.subr.mxu1 %v2424_v28 }
 0x74d   :  { %v2196_v45 = vpop.f32.mrf.mxu0  ;;  %v2297_v12 = vmul.f32 %v2295_v1, %v2295_v1 }
 0x74e   :  { %5325 = vmatmul.mubr.msk.f32.vlgmr.msra.gmra.mxu1 %vm365_vm2, %v2196_v45  ;;  %v4925_v45 = vld [vmem:[%s6541_s13] ss:$0 sm:$0xff] }
 0x74f   :  { %v5321_v58 = vpop.f32.mrf.mxu0  ;;  %v2299_v13 = vsel %vm108_vm0, %v2297_v12, 0.0  ;;  %5339 = vmatpush3.msra.mxu1 %v2424_v28  ;;  %5346 = vmatprep.mubr.msk.f32.mxu1 %vm108_vm0, %v85_v34 }
 0x750   :  { %5340 = vmatprep.subr.mxu1 %v2423_v30 }
 0x751   :  { %5341 = vmatpush3.msra.mxu1 %v2423_v30 }
 0x752   :  { %5342 = vmatprep.subr.mxu1 %v2422_v32 }
 0x753   :  { %5343 = vmatpush3.msra.mxu1 %v2422_v32 }
 0x754   :  { %5344 = vmatprep.subr.mxu1 %v2421_v33 }
 0x755   :  { %5345 = vmatpush3.msra.mxu1 %v2421_v33 }
 0x756   :  { %5347 = vmatmul.mubr.msk.f32.vlgmr.msra.gmra.mxu1 %vm108_vm0, %v86_v35  ;;  %5366 = vmatprep.subr.mxu1 %v5621_v14 }
 0x78e   :  { %v1970_v59 = vpop.f32.mrf.mxu1 }
 0x78f   :  { %v1971_v63 = vadd.f32 %v1970_v59, %v1897_v54  ;;  %v2526_v54 = vld [vmem:[%s6540_s12 + $0x8] sm:$0xff] }
 0x790   :  { %v5306_v60 = vpop.f32.mrf.mxu1 }
 0x80a   :  { %v2119_v62 = vpop.f32.mrf.mxu1 }
 0x80b   :  { %v2123_v4 = vadd.f32 %v2119_v62, %v1971_v63  ;;  %v6132_v63 = vld [vmem:[%s6543_s15] ss:$0 sm:$0xff] }
 0x80c   :  { %v5316_v2 = vpop.f32.mrf.mxu1 }
 0x80e   :  { %v2269_v5 = vpop.f32.mrf.mxu1 }
 0x80f   :  { %v2273_v7 = vadd.f32 %v2269_v5, %v2123_v4 }
 0x810   :  { %v5326_v8 = vpop.f32.mrf.mxu1 }
 0x811   :  { %v2281_v9 = vadd.f32 %v4922_v26, %v2273_v7  ;;  %v2331_v26 = vld [vmem:[%s6582_s30 + $0x10] sm:$0xff] }
 0x812   :  { %5329 = vmatprep.subr.mxu0 %v2331_v26 }
 0x813   :  { %v2283_v10 = vadd.f32 %v2281_v9, %v5787_v6  ;;  %v4923_v6 = vld [vmem:[%s6550_s22] ss:$0 sm:$0xff]  ;;  %5330 = vmatpush3.msra.mxu0 %v2331_v26 }
 0x814   :  { %5331 = vmatprep.subr.mxu0 %v2330_v36 }
 0x815   :  { %v2289_v11 = vsel %vm108_vm0, %v2283_v10, 0.0  ;;  %5332 = vmatpush3.msra.mxu0 %v2330_v36 }
 0x816   :  { %2290 = vadd.xlane.f32.xlu0 %v2289_v11  ;;  %5333 = vmatprep.subr.mxu0 %v2329_v38  ;;  %v5348_v0 = vpop.f32.mrf.mxu1 }
 0x817   :  { %5334 = vmatpush3.msra.mxu0 %v2329_v38  ;;  %v2512_v49 = vadd.f32 %v5348_v0, %v6082_v48 }
 0x818   :  { %v2506_v50 = vpop.f32.mrf.mxu1  ;;  %5352 = vmatprep.subr.mxu0 %v2528_v52 }
 0x819   :  { %5367 = vmatpush3.xpose.msk.msra.mxu1 %vm365_vm2, %v2512_v49  ;;  %v2507_v51 = vadd.f32 %v6082_v48, %v2506_v50 }
 0x81a   :  { %2300 = vadd.xlane.f32.xlu0 %v2299_v13  ;;  %5368 = vmatprep.subr.mxu1 %v5621_v14 }
 0x81b   :  { %2789 = vrot.lane.b32.xlu1 %v2507_v51, %s5624_s2 }
 0x81d   :  { %5369 = vmatpush3.xpose.msk.msra.mxu1 %vm365_vm2, %v2507_v51 }
 0x81e   :  { %5380 = vmatprep.subr.mxu1 %v5621_v14 }
 0x89f   :  { %v2291_v15 = vpop.xlane.xlu0 %2290 }
 0x8a0   :  { %v2294_v16 = vmul.f32 0.03125, %v2291_v15 }
 0x8a2   :  { %v2296_v18 = vsub.f32 %v2283_v10, %v2294_v16 }
 0x8a3   :  { %v2301_v19 = vpop.xlane.xlu0 %2300 }
 0x8a4   :  { %v2305_v20 = vmul.f32 0.03125, %v2301_v19  ;;  %v2298_v21 = vmul.f32 %v2296_v18, %v2296_v18 }
 0x8a6   :  { %v2307_v22 = vadd.f32 1e-05, %v2305_v20  ;;  %v2302_v23 = vsel %vm108_vm0, %v2298_v21, 0.0 }
 0x8a7   :  { %2303 = vadd.xlane.f32.xlu0 %v2302_v23 }
 0x8a8   :  { %5558 = vrsqrt.f32 %v2307_v22 }
 0x8b5   :  { %v5559_v24 = vpop.eup %5558 }
 0x8b6   :  { %v2311_v25 = vmul.f32 %v5559_v24, %v2295_v1  ;;  %v2790_v1 = vpop.permute.xlu1 %2789 }
 0x8b8   :  { %v2319_v29 = vmul.f32 %v4923_v6, %v2311_v25 }
 0x8ba   :  { %v6037_v31 = vadd.f32 %v4924_v27, %v2319_v29 }
 0x8bc   :  { %5335 = vmatprep.mubr.msk.f32.mxu0 %vm108_vm0, %v6037_v31 }
 0x8bd   :  { %93 = vrot.lane.b32.xlu0 %v85_v34, %s5620_s9 }
 0x8c1   :  { %2709 = vrot.lane.b32.xlu0 %v2512_v49, %s5623_s4 }
 0x8c5   :  { %2707 = vrot.lane.b32.xlu0 %v2507_v51, %s5623_s4 }
 0x930   :  { %v2304_v39 = vpop.xlane.xlu0 %2303 }
 0x931   :  { %v2306_v40 = vmul.f32 0.03125, %v2304_v39 }
 0x933   :  { %v2308_v37 = vadd.f32 1e-05, %v2306_v40 }
 0x934   :  { %v94_v42 = vpop.permute.xlu0 %93 }
 0x935   :  { %5560 = vrsqrt.f32 %v2308_v37  ;;  %5349 = vmatprep.mubr.msk.f32.mxu1 %vm108_vm0, %v94_v42 }
 0x936   :  { %5350 = vmatmul.mubr.msk.f32.gmra.mxu1 %vm108_vm0, %v96_v41 }
 0x937   :  { %5370 = vmatprep.mubr.msk.f32.mxu1 %vm5622_vm1, %v5621_v14 }
 0x938   :  { %v2710_v56 = vpop.permute.xlu0 %2709 }
 0x93c   :  { %v2708_v57 = vpop.permute.xlu0 %2707 }
 0x942   :  { %v5561_v43 = vpop.eup %5560 }
 0x943   :  { %v2312_v44 = vmul.f32 %v5561_v43, %v2296_v18 }
 0x945   :  { %v2320_v46 = vmul.f32 %v4923_v6, %v2312_v44 }
 0x947   :  { %v6074_v47 = vadd.f32 %v4924_v27, %v2320_v46 }
 0x949   :  { %5336 = vmatmul.mubr.msk.f32.vlgmr.msra.gmra.mxu0 %vm108_vm0, %v6074_v47 }
 0x94a   :  { %5360 = vmatprep.mubr.msk.f32.mxu0 %vm108_vm0, %v85_v34  ;;  %5353 = vmatpush3.msra.mxu0 %v2528_v52 }
 0x94b   :  { %5354 = vmatprep.subr.mxu0 %v2527_v53 }
 0x94c   :  { %5355 = vmatpush3.msra.mxu0 %v2527_v53 }
 0x94d   :  { %5356 = vmatprep.subr.mxu0 %v2526_v54 }
 0x94e   :  { %5357 = vmatpush3.msra.mxu0 %v2526_v54 }
 0x94f   :  { %5358 = vmatprep.subr.mxu0 %v2525_v55 }
 0x950   :  { %5359 = vmatpush3.msra.mxu0 %v2525_v55 }
 0x951   :  { %5361 = vmatmul.mubr.msk.f32.vlgmr.msra.gmra.mxu0 %vm108_vm0, %v86_v35  ;;  %5373 = vmatprep.subr.mxu0 %v5621_v14 }
 0x952   :  { %5363 = vmatprep.mubr.msk.f32.mxu0 %vm108_vm0, %v94_v42  ;;  %5374 = vmatpush3.xpose.msk.msra.mxu0 %vm365_vm2, %v2710_v56 }
 0x953   :  { %5375 = vmatprep.subr.mxu0 %v5621_v14 }
 0x955   :  { %5364 = vmatmul.mubr.msk.f32.gmra.mxu0 %vm108_vm0, %v96_v41 }
 0x956   :  { %5377 = vmatprep.mubr.msk.f32.mxu0 %vm5622_vm1, %v5621_v14  ;;  %5376 = vmatpush3.xpose.msk.msra.mxu0 %vm365_vm2, %v2708_v57 }
 0x957   :  { %5387 = vmatprep.subr.mxu0 %v5621_v14 }
 0x9f6   :  { %v5351_v9 = vpop.f32.mrf.mxu1 }
 0x9f7   :  { %v2522_v12 = vadd.f32 %v5351_v9, %v6082_v48 }
 0x9f8   :  { %v2516_v13 = vpop.f32.mrf.mxu1 }
 0x9f9   :  { %v6154_v16 = vadd.f32 %v6082_v48, %v2516_v13 }
 0xa09   :  { %v5337_v58 = vpop.f32.mrf.mxu0 }
 0xa0a   :  { %v6118_v59 = vadd.f32 %v5337_v58, %v4925_v45 }
 0xa0b   :  { %v2412_v60 = vpop.f32.mrf.mxu0 }
 0xa0c   :  { %v2413_v61 = vadd.f32 %v4925_v45, %v2412_v60 }
 0xa0e   :  { %2787 = vrot.lane.b32.xlu1 %v2413_v61, %s5624_s2  ;;  %2705 = vrot.lane.b32.xlu0 %v2413_v61, %s5623_s4 }
 0xa0f   :  { %5371 = vmatmul.mubr.msk.f32.vlgmr.msra.gmra.mxu1 %vm365_vm2, %v2413_v61 }
 0xa10   :  { %5384 = vmatprep.mubr.msk.f32.mxu1 %vm5622_vm1, %v5621_v14 }
 0xa11   :  { %v5362_v62 = vpop.f32.mrf.mxu0 }
 0xa12   :  { %2869 = vrot.lane.b32.xlu1 %v2413_v61, %s5625_s1  ;;  %2791 = vrot.lane.b32.xlu0 %v2512_v49, %s5624_s2  ;;  %v2608_v35 = vadd.f32 %v5362_v62, %v6132_v63 }
 0xa13   :  { %v2602_v2 = vpop.f32.mrf.mxu0 }
 0xa14   :  { %v6135_v3 = vadd.f32 %v6132_v63, %v2602_v2 }
 0xa15   :  { %v5365_v4 = vpop.f32.mrf.mxu0 }
 0xa16   :  { %2873 = vrot.lane.b32.xlu0 %v2512_v49, %s5625_s1  ;;  %v6138_v5 = vadd.f32 %v5365_v4, %v6132_v63  ;;  %v6233_v4 = vld [vmem:[%s6544_s16] sm:$0xff] }
 0xa17   :  { %v6173_v23 = vpop.f32.mrf.mxu0 }
 0xa1a   :  { %2871 = vrot.lane.b32.xlu0 %v2507_v51, %s5625_s1 }
 0xa80   :  { %v2706_v7 = vpop.permute.xlu0 %2705  ;;  %v2788_v11 = vpop.permute.xlu1 %2787 }
 0xa81   :  { %5378 = vmatmul.mubr.msk.f32.vlgmr.msra.gmra.mxu0 %vm365_vm2, %v2706_v7 }
 0xa82   :  { %5391 = vmatprep.mubr.msk.f32.mxu0 %vm5622_vm1, %v5621_v14 }
 0xa84   :  { %v2792_v8 = vpop.permute.xlu0 %2791  ;;  %v2870_v18 = vpop.permute.xlu1 %2869 }
 0xa85   :  { %5381 = vmatpush3.xpose.msk.msra.mxu1 %vm365_vm2, %v2792_v8 }
 0xa86   :  { %5382 = vmatprep.subr.mxu1 %v5621_v14 }
 0xa88   :  { %v2874_v10 = vpop.permute.xlu0 %2873 }
 0xa89   :  { %5383 = vmatpush3.xpose.msk.msra.mxu1 %vm365_vm2, %v2790_v1  ;;  %5388 = vmatpush3.xpose.msk.msra.mxu0 %vm365_vm2, %v2874_v10 }
 0xa8a   :  { %5389 = vmatprep.subr.mxu0 %v5621_v14  ;;  %5394 = vmatprep.subr.mxu1 %v5621_v14 }
 0xa8c   :  { %v2872_v15 = vpop.permute.xlu0 %2871  ;;  %5385 = vmatmul.mubr.msk.f32.vlgmr.msra.gmra.mxu1 %vm365_vm2, %v2788_v11 }
 0xa8d   :  { %5390 = vmatpush3.xpose.msk.msra.mxu0 %vm365_vm2, %v2872_v15  ;;  %5395 = vmatpush3.xpose.msk.msra.mxu1 %vm365_vm2, %v2522_v12 }
 0xa8e   :  { %5396 = vmatprep.subr.mxu1 %v5621_v14  ;;  %5398 = vmatprep.mubr.msk.f32.mxu1 %vm5622_vm1, %v5621_v14 }
 0xa8f   :  { %5401 = vmatprep.subr.mxu0 %v5621_v14 }
 0xa90   :  { %5392 = vmatmul.mubr.msk.f32.vlgmr.msra.gmra.mxu0 %vm365_vm2, %v2870_v18 }
 0xa91   :  { %5397 = vmatpush3.xpose.msk.msra.mxu1 %vm365_vm2, %v6154_v16  ;;  %5405 = vmatprep.mubr.msk.f32.mxu0 %vm5622_vm1, %v5621_v14 }
 0xa92   :  { %5408 = vmatprep.subr.mxu1 %v5621_v14 }
 0xa94   :  { %5399 = vmatmul.mubr.msk.f32.vlgmr.msra.gmra.mxu1 %vm365_vm2, %v6118_v59 }
 0xa95   :  { %5412 = vmatprep.mubr.msk.f32.mxu1 %vm5622_vm1, %v5621_v14 }
 0xacf   :  { %v2701_v19 = vpop.f32.mrf.mxu1 }
 0xad0   :  { %v3276_v20 = vmul.f32 0.35355338, %v2701_v19 }
 0xad1   :  { %v5372_v21 = vpop.f32.mrf.mxu1 }
 0xad2   :  { %v3285_v22 = vsel %vm3284_vm3, %v3276_v20, -inf  ;;  %v6253_v21 = vld [vmem:[%s6544_s16 + $0x8] sm:$0xff] }
 0xad3   :  { %3286 = vmax.xlane.f32.xlu0 %v3285_v22 }
 0xae9   :  { %3114 = vrot.lane.b32.xlu0 %v6154_v16, %s5624_s2 }
 0xb41   :  { %v2783_v24 = vpop.f32.mrf.mxu0 }
 0xb42   :  { %v3277_v6 = vmul.f32 0.35355338, %v2783_v24 }
 0xb43   :  { %v5379_v25 = vpop.f32.mrf.mxu0 }
 0xb44   :  { %v3288_v27 = vsel %vm3284_vm3, %v3277_v6, -inf }
 0xb45   :  { %3289 = vmax.xlane.f32.xlu1 %v3288_v27 }
 0xb4c   :  { %v2865_v28 = vpop.f32.mrf.mxu1 }
 0xb4d   :  { %v3278_v55 = vmul.f32 0.35355338, %v2865_v28 }
 0xb4e   :  { %v5386_v29 = vpop.f32.mrf.mxu1 }
 0xb4f   :  { %v3291_v56 = vsel %vm3284_vm3, %v3278_v55, -inf }
 0xb50   :  { %v2947_v30 = vpop.f32.mrf.mxu0 }
 0xb51   :  { %v6187_v40 = vmul.f32 0.35355338, %v2947_v30 }
 0xb52   :  { %v5393_v32 = vpop.f32.mrf.mxu0 }
 0xb53   :  { %v3294_v37 = vsel %vm3284_vm3, %v6187_v40, -inf }
 0xb54   :  { %v6176_v33 = vpop.f32.mrf.mxu1 }
 0xb56   :  { %3116 = vrot.lane.b32.xlu1 %v2522_v12, %s5624_s2  ;;  %v5400_v34 = vpop.f32.mrf.mxu1 }
 0xb5a   :  { %3112 = vrot.lane.b32.xlu1 %v6118_v59, %s5624_s2 }
 0xb5c   :  { %v3287_v17 = vpop.xlane.xlu0 %3286 }
 0xb5d   :  { %v3309_v26 = vsub.f32 %v3276_v20, %v3287_v17  ;;  %v6270_v17 = vadd.f32 %v6132_v63, %v6173_v23  ;;  %v3280_v63 = vmul.f32 0.35355338, %v6176_v33 }
 0xb5e   :  { %3450 = vrot.lane.b32.xlu1 %v2608_v35, %s5623_s4 }
 0xb5f   :  { %v3317_v36 = vmul.f32 1.442695, %v3309_v26 }
 0xb60   :  { %v3115_v46 = vpop.permute.xlu0 %3114 }
 0xb61   :  { %5562 = vpow2.f32 %v3317_v36 }
 0xb62   :  { %3034 = vrot.lane.b32.xlu1 %v2522_v12, %s5623_s4 }
 0xb66   :  { %3030 = vrot.lane.b32.xlu1 %v6118_v59, %s5623_s4 }
 0xb6e   :  { %v5563_v38 = vpop.eup %5562 }
 0xb6f   :  { %v3333_v39 = vsel %vm3284_vm3, %v5563_v38, 0.0 }
 0xb70   :  { %3334 = vadd.xlane.f32.xlu0 %v3333_v39 }
 0xb8a   :  { %3295 = vmax.xlane.f32.xlu1 %v3294_v37 }
 0xb9b   :  { %3198 = vrot.lane.b32.xlu1 %v2522_v12, %s5625_s1 }
 0xb9f   :  { %3194 = vrot.lane.b32.xlu1 %v6118_v59, %s5625_s1 }
 0xba3   :  { %3675 = vrot.lane.b32.xlu1 %v2608_v35, %s5624_s2 }
 0xba7   :  { %3828 = vrot.lane.b32.xlu1 %v2608_v35, %s5625_s1 }
 0xbce   :  { %v3290_v41 = vpop.xlane.xlu1 %3289 }
 0xbcf   :  { %v3310_v42 = vsub.f32 %v3277_v6, %v3290_v41 }
 0xbd1   :  { %v3319_v43 = vmul.f32 1.442695, %v3310_v42  ;;  %v3297_v42 = vsel %vm3284_vm3, %v3280_v63, -inf }
 0xbd2   :  { %v3117_v44 = vpop.permute.xlu1 %3116 }
 0xbd3   :  { %5564 = vpow2.f32 %v3319_v43  ;;  %5409 = vmatpush3.xpose.msk.msra.mxu1 %vm365_vm2, %v3117_v44 }
 0xbd4   :  { %5410 = vmatprep.subr.mxu1 %v5621_v14 }
 0xbd6   :  { %v3113_v48 = vpop.permute.xlu1 %3112 }
 0xbd7   :  { %5411 = vmatpush3.xpose.msk.msra.mxu1 %vm365_vm2, %v3115_v46  ;;  %v6293_v46 = vld [vmem:[%s6544_s16 + $0x10] sm:$0xff] }
 0xbd8   :  { %5422 = vmatprep.subr.mxu1 %v5621_v14 }
 0xbda   :  { %v3451_v0 = vpop.permute.xlu1 %3450  ;;  %5413 = vmatmul.mubr.msk.f32.vlgmr.msra.gmra.mxu1 %vm365_vm2, %v3113_v48 }
 0xbdb   :  { %5423 = vmatpush3.msra.mxu1 %v2608_v35  ;;  %5426 = vmatprep.mubr.msk.f32.mxu1 %vm5622_vm1, %v5621_v14 }
 0xbdc   :  { %5424 = vmatprep.subr.mxu1 %v5621_v14 }
 0xbdd   :  { %5425 = vmatpush3.msra.mxu1 %v6135_v3 }
 0xbde   :  { %v3035_v49 = vpop.permute.xlu1 %3034  ;;  %5429 = vmatprep.subr.mxu1 %v5621_v14 }
 0xbdf   :  { %5402 = vmatpush3.xpose.msk.msra.mxu0 %vm365_vm2, %v3035_v49 }
 0xbe0   :  { %v5565_v50 = vpop.eup %5564  ;;  %5403 = vmatprep.subr.mxu0 %v5621_v14 }
 0xbe1   :  { %v3336_v51 = vsel %vm3284_vm3, %v5565_v50, 0.0 }
 0xbe2   :  { %3337 = vadd.xlane.f32.xlu0 %v3336_v51  ;;  %v3031_v45 = vpop.permute.xlu1 %3030 }
 0xbf8   :  { %3448 = vrot.lane.b32.xlu0 %v6135_v3, %s5623_s4 }
 0xbf9   :  { %v3335_v52 = vpop.xlane.xlu0 %3334 }
 0xbfa   :  { %5566 = vrcp.f32 %v3335_v52 }
 0xbfc   :  { %3032 = vrot.lane.b32.xlu0 %v6154_v16, %s5623_s4 }
 0xc07   :  { %v5567_v53 = vpop.eup %5566 }
 0xc08   :  { %v3365_v54 = vmul.f32 %v5567_v53, %v5563_v38 }
 0xc0a   :  { %5427 = vmatmul.mubr.msk.f32.vlgmr.msra.gmra.mxu1 %vm3284_vm3, %v3365_v54 }
 0xc0b   :  { %5430 = vmatpush3.msra.mxu1 %v3451_v0  ;;  %5433 = vmatprep.mubr.msk.f32.mxu1 %vm5622_vm1, %v5621_v14 }
 0xc0c   :  { %5431 = vmatprep.subr.mxu1 %v5621_v14 }
 0xc13   :  { %v3296_v59 = vpop.xlane.xlu1 %3295 }
 0xc14   :  { %v3312_v1 = vsub.f32 %v6187_v40, %v3296_v59 }
 0xc16   :  { %v3323_v11 = vmul.f32 1.442695, %v3312_v1 }
 0xc17   :  { %v3199_v61 = vpop.permute.xlu1 %3198 }
 0xc1b   :  { %3292 = vmax.xlane.f32.xlu0 %v3291_v56  ;;  %v3195_v15 = vpop.permute.xlu1 %3194 }
 0xc1f   :  { %v3676_v30 = vpop.permute.xlu1 %3675 }
 0xc23   :  { %v3829_v38 = vpop.permute.xlu1 %3828 }
 0xc31   :  { %3196 = vrot.lane.b32.xlu0 %v6154_v16, %s5625_s1 }
 0xc35   :  { %3673 = vrot.lane.b32.xlu0 %v6135_v3, %s5624_s2 }
 0xc6b   :  { %v3338_v57 = vpop.xlane.xlu0 %3337 }
 0xc6c   :  { %5568 = vrcp.f32 %v3338_v57 }
 0xc6f   :  { %v3449_v58 = vpop.permute.xlu0 %3448 }
 0xc70   :  { %5432 = vmatpush3.msra.mxu1 %v3449_v58 }
 0xc71   :  { %5441 = vmatprep.subr.mxu1 %v5621_v14 }
 0xc73   :  { %v3033_v60 = vpop.permute.xlu0 %3032 }
 0xc74   :  { %5404 = vmatpush3.xpose.msk.msra.mxu0 %vm365_vm2, %v3033_v60 }
 0xc75   :  { %5415 = vmatprep.subr.mxu0 %v5621_v14 }
 0xc77   :  { %5406 = vmatmul.mubr.msk.f32.vlgmr.msra.gmra.mxu0 %vm365_vm2, %v3031_v45 }
 0xc78   :  { %5416 = vmatpush3.xpose.msk.msra.mxu0 %vm365_vm2, %v3199_v61  ;;  %5419 = vmatprep.mubr.msk.f32.mxu0 %vm5622_vm1, %v5621_v14 }
 0xc79   :  { %v5569_v62 = vpop.eup %5568  ;;  %5417 = vmatprep.subr.mxu0 %v5621_v14 }
 0xc7a   :  { %v3366_v2 = vmul.f32 %v5569_v62, %v5565_v50  ;;  %v6309_v62 = vld [vmem:[%s6544_s16 + $0x18] sm:$0xff] }
 0xc7c   :  { %5434 = vmatmul.mubr.msk.f32.vlgmr.msra.gmra.mxu1 %vm3284_vm3, %v3366_v2 }
 0xc7d   :  { %5442 = vmatpush3.msra.mxu1 %v6233_v4  ;;  %5443 = vmatprep.mubr.msk.f32.mxu1 %vm5622_vm1, %v5621_v14 }
 0xc7e   :  { %5453 = vmatprep.subr.mxu1 %v5621_v14 }
 0xc9a   :  { %v6240_v7 = vpop.f32.mrf.mxu1 }
 0xc9b   :  { %v3282_v57 = vmul.f32 0.35355338, %v6240_v7 }
 0xc9c   :  { %v5414_v8 = vpop.f32.mrf.mxu1 }
 0xc9d   :  { %v3303_v60 = vsel %vm3284_vm3, %v3282_v57, -inf }
 0xca4   :  { %v3293_v9 = vpop.xlane.xlu0 %3292 }
 0xca5   :  { %v3311_v10 = vsub.f32 %v3278_v55, %v3293_v9 }
 0xca7   :  { %v3321_v12 = vmul.f32 1.442695, %v3311_v10 }
 0xca8   :  { %v3197_v13 = vpop.permute.xlu0 %3196 }
 0xca9   :  { %5570 = vpow2.f32 %v3321_v12  ;;  %5418 = vmatpush3.xpose.msk.msra.mxu0 %vm365_vm2, %v3197_v13 }
 0xcaa   :  { %5436 = vmatprep.subr.mxu0 %v5621_v14  ;;  %5572 = vpow2.f32 %v3323_v11 }
 0xcac   :  { %5420 = vmatmul.mubr.msk.f32.vlgmr.msra.gmra.mxu0 %vm365_vm2, %v3195_v15  ;;  %v3674_v32 = vpop.permute.xlu0 %3673 }
 0xcad   :  { %5438 = vmatprep.mubr.msk.f32.mxu0 %vm5622_vm1, %v5621_v14  ;;  %5437 = vmatpush3.msra.mxu0 %v6253_v21 }
 0xcae   :  { %5446 = vmatprep.subr.mxu0 %v5621_v14 }
 0xcb6   :  { %v5571_v16 = vpop.eup %5570 }
 0xcb7   :  { %v3339_v18 = vsel %vm3284_vm3, %v5571_v16, 0.0  ;;  %v5573_v19 = vpop.eup %5572 }
 0xcb8   :  { %3340 = vadd.xlane.f32.xlu0 %v3339_v18  ;;  %v3342_v20 = vsel %vm3284_vm3, %v5573_v19, 0.0 }
 0xcbc   :  { %3343 = vadd.xlane.f32.xlu0 %v3342_v20 }
 0xcca   :  { %v3442_v22 = vpop.f32.mrf.mxu1 }
 0xccb   :  { %5444 = vmatmul.mubr.msk.f32.vlgmr.msra.gmra.mxu1 %vm365_vm2, %v3442_v22 }
 0xccc   :  { %v5428_v24 = vpop.f32.mrf.mxu1  ;;  %5455 = vmatprep.mubr.msk.f32.mxu1 %vm5622_vm1, %v5621_v14  ;;  %5454 = vmatpush3.msra.mxu1 %v6293_v46 }
 0xccd   :  { %5465 = vmatprep.subr.mxu1 %v5621_v14 }
 0xcd2   :  { %3826 = vrot.lane.b32.xlu0 %v6135_v3, %s5625_s1 }
 0xd37   :  { %v3108_v6 = vpop.f32.mrf.mxu0 }
 0xd38   :  { %v3281_v25 = vmul.f32 0.35355338, %v3108_v6 }
 0xd39   :  { %v5407_v27 = vpop.f32.mrf.mxu0 }
 0xd3a   :  { %v3300_v28 = vsel %vm3284_vm3, %v3281_v25, -inf }
 0xd3b   :  { %3301 = vmax.xlane.f32.xlu1 %v3300_v28 }
 0xd3c   :  { %v3523_v29 = vpop.f32.mrf.mxu1 }
 0xd3d   :  { %5439 = vmatmul.mubr.msk.f32.vlgmr.msra.gmra.mxu0 %vm365_vm2, %v3523_v29 }
 0xd3e   :  { %5447 = vmatpush3.msra.mxu0 %v3676_v30  ;;  %v5435_v34 = vpop.f32.mrf.mxu1  ;;  %5450 = vmatprep.mubr.msk.f32.mxu0 %vm5622_vm1, %v5621_v14 }
 0xd3f   :  { %5448 = vmatprep.subr.mxu0 %v5621_v14  ;;  %v6346_v34 = vld [vmem:[%s6545_s17] ss:$0 sm:$0xff] }
 0xd40   :  { %5449 = vmatpush3.msra.mxu0 %v3674_v32 }
 0xd41   :  { %v3341_v3 = vpop.xlane.xlu0 %3340  ;;  %5458 = vmatprep.subr.mxu0 %v5621_v14 }
 0xd42   :  { %5574 = vrcp.f32 %v3341_v3 }
 0xd45   :  { %v3344_v35 = vpop.xlane.xlu0 %3343 }
 0xd46   :  { %5576 = vrcp.f32 %v3344_v35 }
 0xd49   :  { %v3827_v40 = vpop.permute.xlu0 %3826 }
 0xd4c   :  { %4054 = vrot.lane.b32.xlu1 %v6270_v17, %s5623_s4 }
 0xd4f   :  { %v5575_v26 = vpop.eup %5574 }
 0xd50   :  { %v3367_v36 = vmul.f32 %v5575_v26, %v5571_v16 }
 0xd52   :  { %5451 = vmatmul.mubr.msk.f32.vlgmr.msra.gmra.mxu0 %vm3284_vm3, %v3367_v36 }
 0xd53   :  { %v5577_v39 = vpop.eup %5576  ;;  %5459 = vmatpush3.msra.mxu0 %v3829_v38  ;;  %5462 = vmatprep.mubr.msk.f32.mxu0 %vm5622_vm1, %v5621_v14 }
 0xd54   :  { %5460 = vmatprep.subr.mxu0 %v5621_v14  ;;  %v3368_v37 = vmul.f32 %v5577_v39, %v5573_v19 }
 0xd55   :  { %5461 = vmatpush3.msra.mxu0 %v3827_v40 }
 0xd56   :  { %5470 = vmatprep.subr.mxu0 %v5621_v14  ;;  %5463 = vmatmul.mubr.msk.f32.vlgmr.msra.gmra.mxu0 %vm3284_vm3, %v3368_v37 }
 0xd57   :  { %5471 = vmatpush3.msra.mxu0 %v6138_v5  ;;  %5474 = vmatprep.mubr.msk.f32.mxu0 %vm5622_vm1, %v5621_v14 }
 0xd58   :  { %5472 = vmatprep.subr.mxu0 %v5621_v14 }
 0xd59   :  { %5473 = vmatpush3.msra.mxu0 %v6270_v17 }
 0xd5a   :  { %5484 = vmatprep.subr.mxu0 %v5621_v14 }
 0xd6c   :  { %v3272_v23 = vpop.f32.mrf.mxu0 }
 0xd6d   :  { %v3283_v58 = vmul.f32 0.35355338, %v3272_v23 }
 0xd6e   :  { %v5421_v41 = vpop.f32.mrf.mxu0 }
 0xd6f   :  { %v3306_v61 = vsel %vm3284_vm3, %v3283_v58, -inf }
 0xd70   :  { %3298 = vmax.xlane.f32.xlu1 %v3297_v42 }
 0xd8b   :  { %v6288_v43 = vpop.f32.mrf.mxu1 }
 0xd8d   :  { %v5445_v44 = vpop.f32.mrf.mxu1 }
 0xdc4   :  { %v3302_v48 = vpop.xlane.xlu1 %3301 }
 0xdc5   :  { %v3314_v0 = vsub.f32 %v3281_v25, %v3302_v48 }
 0xdc7   :  { %v3327_v33 = vmul.f32 1.442695, %v3314_v0 }
 0xdc8   :  { %v4055_v51 = vpop.permute.xlu1 %4054 }
 0xdc9   :  { %5578 = vpow2.f32 %v3327_v33 }
 0xdd6   :  { %v5579_v49 = vpop.eup %5578 }
 0xdd7   :  { %v3348_v50 = vsel %vm3284_vm3, %v5579_v49, 0.0 }
 0xdd8   :  { %3349 = vadd.xlane.f32.xlu0 %v3348_v50 }
 0xdee   :  { %4056 = vrot.lane.b32.xlu0 %v6138_v5, %s5623_s4 }
 0xdf9   :  { %v3299_v52 = vpop.xlane.xlu1 %3298 }
 0xdfa   :  { %v3313_v53 = vsub.f32 %v3280_v63, %v3299_v52 }
 0xdfc   :  { %v3325_v54 = vmul.f32 1.442695, %v3313_v53 }
 0xdfd   :  { %v6300_v55 = vpop.f32.mrf.mxu0 }
 0xdfe   :  { %5580 = vpow2.f32 %v3325_v54 }
 0xdff   :  { %v5440_v56 = vpop.f32.mrf.mxu0 }
 0xe0b   :  { %v5581_v45 = vpop.eup %5580 }
 0xe0c   :  { %v3345_v59 = vsel %vm3284_vm3, %v5581_v45, 0.0 }
 0xe0d   :  { %3346 = vadd.xlane.f32.xlu1 %v3345_v59  ;;  %3304 = vmax.xlane.f32.xlu0 %v3303_v60 }
 0xe11   :  { %3307 = vmax.xlane.f32.xlu0 %v3306_v61 }
 0xe12   :  { %v3748_v2 = vpop.f32.mrf.mxu0 }
 0xe13   :  { %5456 = vmatmul.mubr.msk.f32.vlgmr.msra.gmra.mxu1 %vm365_vm2, %v3748_v2 }
 0xe14   :  { %v5452_v7 = vpop.f32.mrf.mxu0  ;;  %5466 = vmatpush3.msra.mxu1 %v6309_v62  ;;  %5467 = vmatprep.mubr.msk.f32.mxu1 %vm5622_vm1, %v5621_v14 }
 0xe15   :  { %5477 = vmatprep.subr.mxu1 %v5621_v14 }
 0xe16   :  { %v3901_v8 = vpop.f32.mrf.mxu0 }
 0xe17   :  { %5468 = vmatmul.mubr.msk.f32.vlgmr.msra.gmra.mxu1 %vm365_vm2, %v3901_v8 }
 0xe18   :  { %v5464_v1 = vpop.f32.mrf.mxu0  ;;  %5481 = vmatprep.mubr.msk.f32.mxu1 %vm5622_vm1, %v5621_v14 }
 0xe1e   :  { %4279 = vrot.lane.b32.xlu1 %v6270_v17, %s5624_s2 }
 0xe27   :  { %4281 = vrot.lane.b32.xlu0 %v6138_v5, %s5624_s2 }
 0xe61   :  { %v3350_v9 = vpop.xlane.xlu0 %3349 }
 0xe62   :  { %5582 = vrcp.f32 %v3350_v9 }
 0xe65   :  { %v4057_v10 = vpop.permute.xlu0 %4056 }
 0xe66   :  { %5478 = vmatpush3.msra.mxu1 %v4057_v10 }
 0xe67   :  { %5479 = vmatprep.subr.mxu1 %v5621_v14 }
 0xe68   :  { %5480 = vmatpush3.msra.mxu1 %v4055_v51 }
 0xe69   :  { %5489 = vmatprep.subr.mxu1 %v5621_v14 }
 0xe6f   :  { %v5583_v11 = vpop.eup %5582 }
 0xe70   :  { %v3370_v12 = vmul.f32 %v5583_v11, %v5579_v49 }
 0xe72   :  { %5482 = vmatmul.mubr.msk.f32.vlgmr.msra.gmra.mxu1 %vm3284_vm3, %v3370_v12  ;;  %v4646_v12 = vld [vmem:[%s6546_s18 + $0x38] sm:$0xff] }
 0xe73   :  { %5490 = vmatpush3.msra.mxu1 %v6233_v4  ;;  %5491 = vmatprep.mubr.msk.f32.mxu1 %vm5622_vm1, %v5621_v14 }
 0xe74   :  { %5501 = vmatprep.subr.mxu1 %v5621_v14 }
 0xe96   :  { %v3347_v13 = vpop.xlane.xlu1 %3346  ;;  %v3305_v15 = vpop.xlane.xlu0 %3304 }
 0xe97   :  { %5584 = vrcp.f32 %v3347_v13  ;;  %v3315_v16 = vsub.f32 %v3282_v57, %v3305_v15  ;;  %v4645_v13 = vld [vmem:[%s6546_s18 + $0x30] sm:$0xff]  ;;  %v4643_v15 = vld [vmem:[%s6546_s18 + $0x20] sm:$0xff] }
 0xe99   :  { %v3329_v18 = vmul.f32 1.442695, %v3315_v16  ;;  %v4642_v16 = vld [vmem:[%s6546_s18 + $0x18] sm:$0xff] }
 0xe9a   :  { %v3308_v19 = vpop.xlane.xlu0 %3307  ;;  %v4280_v40 = vpop.permute.xlu1 %4279 }
 0xe9b   :  { %5586 = vpow2.f32 %v3329_v18  ;;  %v3316_v20 = vsub.f32 %v3283_v58, %v3308_v19  ;;  %v4641_v18 = vld [vmem:[%s6546_s18 + $0x10] sm:$0xff]  ;;  %v4640_v19 = vld [vmem:[%s6546_s18 + $0x8] sm:$0xff] }
 0xe9d   :  { %v3331_v22 = vmul.f32 1.442695, %v3316_v20  ;;  %v4639_v20 = vld [vmem:[%s6546_s18] sm:$0xff] }
 0xe9e   :  { %v4282_v38 = vpop.permute.xlu0 %4281 }
 0xe9f   :  { %5588 = vpow2.f32 %v3331_v22 }
 0xea4   :  { %v5585_v24 = vpop.eup %5584 }
 0xea5   :  { %v3369_v6 = vmul.f32 %v5585_v24, %v5581_v45 }
 0xea7   :  { %5475 = vmatmul.mubr.msk.f32.vlgmr.msra.gmra.mxu0 %vm3284_vm3, %v3369_v6 }
 0xea8   :  { %v5587_v4 = vpop.eup %5586  ;;  %5485 = vmatpush3.msra.mxu0 %v6253_v21  ;;  %5486 = vmatprep.mubr.msk.f32.mxu0 %vm5622_vm1, %v5621_v14  ;;  %v3670_v21 = vadd.f32 %v6288_v43, %v6300_v55 }
 0xea9   :  { %v3351_v25 = vsel %vm3284_vm3, %v5587_v4, 0.0  ;;  %5494 = vmatprep.subr.mxu0 %v5621_v14 }
 0xeaa   :  { %3352 = vadd.xlane.f32.xlu0 %v3351_v25 }
 0xeac   :  { %v5589_v27 = vpop.eup %5588 }
 0xead   :  { %v3354_v28 = vsel %vm3284_vm3, %v5589_v27, 0.0 }
 0xeae   :  { %3355 = vadd.xlane.f32.xlu1 %v3354_v28 }
 0xebf   :  { %4434 = vrot.lane.b32.xlu1 %v6138_v5, %s5625_s1 }
 0xec0   :  { %4432 = vrot.lane.b32.xlu0 %v6270_v17, %s5625_s1 }
 0xed3   :  { %v3821_v29 = vpop.f32.mrf.mxu1 }
 0xed4   :  { %v3825_v32 = vadd.f32 %v3821_v29, %v3670_v21 }
 0xed5   :  { %v5457_v30 = vpop.f32.mrf.mxu1 }
 0xed6   :  { %v6408_v30 = vld [vmem:[%s6552_s24] ss:$0 sm:$0xff] }
 0xed7   :  { %v3974_v3 = vpop.f32.mrf.mxu1 }
 0xed8   :  { %v3978_v35 = vadd.f32 %v3974_v3, %v3825_v32 }
 0xed9   :  { %v5469_v26 = vpop.f32.mrf.mxu1 }
 0xeda   :  { %v4591_v36 = vadd.f32 %v6346_v34, %v3978_v35  ;;  %v4777_v26 = vld [vmem:[%s6548_s20 + $0xf8] sm:$0xff] }
 0xedc   :  { %v4593_v5 = vadd.f32 %v4591_v36, %v6037_v31  ;;  %v4761_v36 = vld [vmem:[%s6548_s20 + $0x78] sm:$0xff] }
 0xede   :  { %v4597_v17 = vsel %vm108_vm0, %v4593_v5, 0.0 }
 0xee3   :  { %4598 = vadd.xlane.f32.xlu1 %v4597_v17  ;;  %v4760_v17 = vld [vmem:[%s6548_s20 + $0x70] sm:$0xff] }
 0xf32   :  { %v4129_v39 = vpop.f32.mrf.mxu1 }
 0xf33   :  { %v3353_v37 = vpop.xlane.xlu0 %3352  ;;  %5487 = vmatmul.mubr.msk.f32.vlgmr.msra.gmra.mxu0 %vm365_vm2, %v4129_v39  ;;  %v4774_v39 = vld [vmem:[%s6548_s20 + $0xe0] sm:$0xff] }
 0xf34   :  { %5590 = vrcp.f32 %v3353_v37  ;;  %5495 = vmatpush3.msra.mxu0 %v4282_v38  ;;  %v5483_v63 = vpop.f32.mrf.mxu1  ;;  %5498 = vmatprep.mubr.msk.f32.mxu0 %vm5622_vm1, %v5621_v14  ;;  %v4759_v38 = vld [vmem:[%s6548_s20 + $0x68] sm:$0xff]  ;;  %v4773_v37 = vld [vmem:[%s6548_s20 + $0xd8] sm:$0xff] }
 0xf35   :  { %5496 = vmatprep.subr.mxu0 %v5621_v14  ;;  %v4757_v63 = vld [vmem:[%s6548_s20 + $0x58] sm:$0xff] }
 0xf36   :  { %5497 = vmatpush3.msra.mxu0 %v4280_v40  ;;  %v4758_v40 = vld [vmem:[%s6548_s20 + $0x60] sm:$0xff] }
 0xf37   :  { %v3356_v23 = vpop.xlane.xlu1 %3355  ;;  %5506 = vmatprep.subr.mxu0 %v5621_v14  ;;  %v4433_v44 = vpop.permute.xlu0 %4432 }
 0xf38   :  { %5592 = vrcp.f32 %v3356_v23  ;;  %v4772_v23 = vld [vmem:[%s6548_s20 + $0xd0] sm:$0xff] }
 0xf3b   :  { %v4435_v42 = vpop.permute.xlu1 %4434 }
 0xf41   :  { %v5591_v31 = vpop.eup %5590 }
 0xf42   :  { %v3371_v41 = vmul.f32 %v5591_v31, %v5587_v4  ;;  %v4756_v31 = vld [vmem:[%s6548_s20 + $0x50] sm:$0xff] }
 0xf44   :  { %5499 = vmatmul.mubr.msk.f32.vlgmr.msra.gmra.mxu0 %vm3284_vm3, %v3371_v41  ;;  %v4771_v41 = vld [vmem:[%s6548_s20 + $0xc8] sm:$0xff] }
 0xf45   :  { %v5593_v43 = vpop.eup %5592  ;;  %5507 = vmatpush3.msra.mxu0 %v4435_v42  ;;  %5510 = vmatprep.mubr.msk.f32.mxu0 %vm5622_vm1, %v5621_v14  ;;  %v4755_v42 = vld [vmem:[%s6548_s20 + $0x48] sm:$0xff] }
 0xf46   :  { %5508 = vmatprep.subr.mxu0 %v5621_v14  ;;  %v3372_v48 = vmul.f32 %v5593_v43, %v5589_v27  ;;  %v4770_v43 = vld [vmem:[%s6548_s20 + $0xc0] sm:$0xff] }
 0xf47   :  { %5509 = vmatpush3.msra.mxu0 %v4433_v44  ;;  %v4754_v44 = vld [vmem:[%s6548_s20 + $0x40] sm:$0xff] }
 0xf48   :  { %5511 = vmatmul.mubr.msk.f32.vlgmr.msra.gmra.mxu0 %vm3284_vm3, %v3372_v48  ;;  %4689 = vmatprep.subr.mxu0 %v4646_v12  ;;  %v4769_v48 = vld [vmem:[%s6548_s20 + $0xb8] sm:$0xff]  ;;  %v4647_v12 = vld [vmem:[%s6547_s19] sm:$0x3] }
 0xf49   :  { %4729 = vmatprep.mubr.f32.mxu0 %v5621_v14  ;;  %4690 = vmatpush1.msra.mxu0 %v4645_v13 }
 0xf67   :  { %v4048_v0 = vpop.f32.mrf.mxu0 }
 0xf68   :  { %5492 = vmatmul.mubr.msk.f32.vlgmr.msra.gmra.mxu1 %vm365_vm2, %v4048_v0  ;;  %v4753_v0 = vld [vmem:[%s6548_s20 + $0x38] sm:$0xff] }
 0xf69   :  { %v5476_v33 = vpop.f32.mrf.mxu0  ;;  %5502 = vmatpush3.msra.mxu1 %v6293_v46  ;;  %5503 = vmatprep.mubr.msk.f32.mxu1 %vm5622_vm1, %v5621_v14 }
 0xf6a   :  { %5513 = vmatprep.subr.mxu1 %v5621_v14  ;;  %v4768_v33 = vld [vmem:[%s6548_s20 + $0xb0] sm:$0xff] }
 0xf6c   :  { %v4599_v57 = vpop.xlane.xlu1 %4598 }
 0xf6d   :  { %v4603_v59 = vmul.f32 0.03125, %v4599_v57  ;;  %v4763_v57 = vld [vmem:[%s6548_s20 + $0x88] sm:$0xff] }
 0xff3   :  { %v4202_v49 = vpop.f32.mrf.mxu0 }
 0xff5   :  { %v5488_v50 = vpop.f32.mrf.mxu0 }
 0xff6   :  { %v4767_v50 = vld [vmem:[%s6548_s20 + $0xa8] sm:$0xff] }
0x1004   :  { %v4354_v51 = vpop.f32.mrf.mxu0 }
0x1005   :  { %5504 = vmatmul.mubr.msk.f32.vlgmr.msra.gmra.mxu1 %vm365_vm2, %v4354_v51  ;;  %v4751_v51 = vld [vmem:[%s6548_s20 + $0x28] sm:$0xff] }
0x1006   :  { %5514 = vmatpush3.msra.mxu1 %v6309_v62  ;;  %v5500_v52 = vpop.f32.mrf.mxu0  ;;  %5515 = vmatprep.mubr.msk.f32.mxu1 %vm5622_vm1, %v5621_v14  ;;  %v4605_v62 = vsub.f32 %v4593_v5, %v4603_v59  ;;  %v4776_v5 = vld [vmem:[%s6548_s20 + $0xf0] sm:$0xff]  ;;  %v4746_v59 = vld [vmem:[%s6548_s20] sm:$0xff] }
0x1007   :  { %5136 = vmatprep.subr.mxu1 %v4777_v26  ;;  %v4766_v52 = vld [vmem:[%s6548_s20 + $0xa0] sm:$0xff] }
0x1008   :  { %v4507_v53 = vpop.f32.mrf.mxu0  ;;  %v4607_v10 = vmul.f32 %v4605_v62, %v4605_v62 }
0x1009   :  { %5516 = vmatmul.mubr.msk.f32.vlgmr.msra.gmra.mxu1 %vm365_vm2, %v4507_v53  ;;  %v4750_v53 = vld [vmem:[%s6548_s20 + $0x20] sm:$0xff] }
0x100a   :  { %v5512_v46 = vpop.f32.mrf.mxu0  ;;  %v4609_v11 = vsel %vm108_vm0, %v4607_v10, 0.0  ;;  %5137 = vmatpush3.msra.mxu1 %v4761_v36 }
0x100b   :  { %5138 = vmatprep.subr.mxu1 %v4776_v5  ;;  %v4765_v46 = vld [vmem:[%s6548_s20 + $0x98] sm:$0xff] }
0x100c   :  { %5139 = vmatpush3.msra.mxu1 %v4760_v17 }
0x1028   :  { %v4275_v54 = vpop.f32.mrf.mxu1 }
0x1029   :  { %v4276_v55 = vadd.f32 %v4275_v54, %v4202_v49  ;;  %v4752_v49 = vld [vmem:[%s6548_s20 + $0x30] sm:$0xff]  ;;  %v4749_v54 = vld [vmem:[%s6548_s20 + $0x18] sm:$0xff] }
0x102a   :  { %v5493_v56 = vpop.f32.mrf.mxu1 }
0x102b   :  { %v4748_v56 = vld [vmem:[%s6548_s20 + $0x10] sm:$0xff] }
0x10c5   :  { %v4427_v45 = vpop.f32.mrf.mxu1 }
0x10c6   :  { %v4431_v60 = vadd.f32 %v4427_v45, %v4276_v55  ;;  %v4764_v55 = vld [vmem:[%s6548_s20 + $0x90] sm:$0xff]  ;;  %v4747_v45 = vld [vmem:[%s6548_s20 + $0x8] sm:$0xff] }
0x10c7   :  { %v5505_v58 = vpop.f32.mrf.mxu1 }
0x10c8   :  { %v4762_v58 = vld [vmem:[%s6548_s20 + $0x80] sm:$0xff] }
0x10c9   :  { %v4580_v61 = vpop.f32.mrf.mxu1 }
0x10ca   :  { %v4584_v2 = vadd.f32 %v4580_v61, %v4431_v60 }
0x10cb   :  { %v5517_v7 = vpop.f32.mrf.mxu1 }
0x10cc   :  { %v4592_v8 = vadd.f32 %v6346_v34, %v4584_v2  ;;  %v6413_v34 = vld [vmem:[%s6553_s25] ss:$0 sm:$0xff] }
0x10ce   :  { %v4594_v1 = vadd.f32 %v4592_v8, %v6074_v47  ;;  %v4644_v47 = vld [vmem:[%s6546_s18 + $0x28] sm:$0xff] }
0x10cf   :  { %4691 = vmatprep.subr.mxu0 %v4644_v47 }
0x10d0   :  { %v4600_v9 = vsel %vm108_vm0, %v4594_v1, 0.0  ;;  %4692 = vmatpush1.msra.mxu0 %v4643_v15 }
0x10d1   :  { %4601 = vadd.xlane.f32.xlu0 %v4600_v9  ;;  %4693 = vmatprep.subr.mxu0 %v4642_v16  ;;  %v4649_v9 = vlaneseq }
0x10d2   :  { %4694 = vmatpush1.msra.mxu0 %v4641_v18 }
0x10d3   :  { %4695 = vmatprep.subr.mxu0 %v4640_v19  ;;  %v4650_v10 = vshrl.u32 %v4649_v9, 7 }
0x10d4   :  { %4696 = vmatpush1.msra.mxu0 %v4639_v20 }
0x10d5   :  { %4610 = vadd.xlane.f32.xlu0 %v4609_v11  ;;  %v4651_v11 = vsub.s32 0, %v4650_v10  ;;  %v4655_v13 = vsub.s32 1, %v4650_v10 }
0x10d7   :  { %v4652_v47 = vrot.slane %v4647_v12, %v4651_v11  ;;  %v4656_v15 = vrot.slane %v4647_v12, %v4655_v13 }
0x115a   :  { %v4602_v22 = vpop.xlane.xlu0 %4601 }
0x115b   :  { %v4604_v24 = vmul.f32 0.03125, %v4602_v22 }
0x115d   :  { %v6400_v6 = vsub.f32 %v4594_v1, %v4604_v24 }
0x115e   :  { %v4611_v4 = vpop.xlane.xlu0 %4610 }
0x115f   :  { %v4615_v25 = vmul.f32 0.03125, %v4611_v4  ;;  %v4608_v27 = vmul.f32 %v6400_v6, %v6400_v6 }
0x1161   :  { %v4617_v28 = vadd.f32 1e-05, %v4615_v25  ;;  %v4612_v29 = vsel %vm108_vm0, %v4608_v27, 0.0 }
0x1162   :  { %4613 = vadd.xlane.f32.xlu1 %v4612_v29 }
0x1163   :  { %5594 = vrsqrt.f32 %v4617_v28 }
0x1170   :  { %v5595_v21 = vpop.eup %5594 }
0x1171   :  { %v4621_v32 = vmul.f32 %v5595_v21, %v4605_v62 }
0x1173   :  { %v4629_v3 = vmul.f32 %v6408_v30, %v4621_v32 }
0x1175   :  { %v4637_v35 = vadd.f32 %v6413_v34, %v4629_v3 }
0x1177   :  { %4981 = vmatmul.mubr.msk.f32.vlgmr.msra.gmra.mxu0 %vm108_vm0, %v4637_v35  ;;  %v4983_v35 = vld [vmem:[%s6549_s21] ss:$0 sm:$0xff] }
0x1178   :  { %4735 = vmatprep.mubr.f32.mxu0 %v5621_v14  ;;  %v4775_v14 = vld [vmem:[%s6548_s20 + $0xe8] sm:$0xff] }
0x1179   :  { %5140 = vmatprep.subr.mxu1 %v4775_v14 }
0x117a   :  { %5141 = vmatpush3.msra.mxu1 %v4759_v38 }
0x117b   :  { %5142 = vmatprep.subr.mxu1 %v4774_v39 }
0x117c   :  { %5143 = vmatpush3.msra.mxu1 %v4758_v40 }
0x117d   :  { %5144 = vmatprep.subr.mxu1 %v4773_v37 }
0x117e   :  { %5145 = vmatpush3.msra.mxu1 %v4757_v63 }
0x117f   :  { %5146 = vmatprep.subr.mxu1 %v4772_v23 }
0x1180   :  { %5147 = vmatpush3.msra.mxu1 %v4756_v31 }
0x1181   :  { %5148 = vmatprep.subr.mxu1 %v4771_v41 }
0x1182   :  { %5149 = vmatpush3.msra.mxu1 %v4755_v42 }
0x1183   :  { %5150 = vmatprep.subr.mxu1 %v4770_v43 }
0x1184   :  { %5151 = vmatpush3.msra.mxu1 %v4754_v44 }
0x1185   :  { %5152 = vmatprep.subr.mxu1 %v4769_v48 }
0x1186   :  { %5153 = vmatpush3.msra.mxu1 %v4753_v0 }
0x1187   :  { %5154 = vmatprep.subr.mxu1 %v4768_v33 }
0x1188   :  { %5155 = vmatpush3.msra.mxu1 %v4752_v49 }
0x1189   :  { %5156 = vmatprep.subr.mxu1 %v4767_v50 }
0x118a   :  { %5157 = vmatpush3.msra.mxu1 %v4751_v51 }
0x118b   :  { %5158 = vmatprep.subr.mxu1 %v4766_v52 }
0x118c   :  { %5159 = vmatpush3.msra.mxu1 %v4750_v53 }
0x118d   :  { %5160 = vmatprep.subr.mxu1 %v4765_v46 }
0x118e   :  { %5161 = vmatpush3.msra.mxu1 %v4749_v54 }
0x118f   :  { %5162 = vmatprep.subr.mxu1 %v4764_v55 }
0x1190   :  { %5163 = vmatpush3.msra.mxu1 %v4748_v56 }
0x1191   :  { %5164 = vmatprep.subr.mxu1 %v4763_v57 }
0x1192   :  { %5165 = vmatpush3.msra.mxu1 %v4747_v45 }
0x1193   :  { %5166 = vmatprep.subr.mxu1 %v4762_v58 }
0x1194   :  { %5167 = vmatpush3.msra.mxu1 %v4746_v59 }
0x11eb   :  { %v4614_v60 = vpop.xlane.xlu1 %4613 }
0x11ec   :  { %v4616_v61 = vmul.f32 0.03125, %v4614_v60 }
0x11ee   :  { %v4618_v2 = vadd.f32 1e-05, %v4616_v61 }
0x11f0   :  { %5596 = vrsqrt.f32 %v4618_v2 }
0x11fd   :  { %v5597_v7 = vpop.eup %5596 }
0x11fe   :  { %v4622_v62 = vmul.f32 %v5597_v7, %v6400_v6 }
0x1200   :  { %v4630_v8 = vmul.f32 %v6408_v30, %v4622_v62 }
0x1202   :  { %v4638_v1 = vadd.f32 %v6413_v34, %v4630_v8 }
0x1204   :  { %4982 = vmatmul.mubr.msk.f32.gmra.mxu0 %vm108_vm0, %v4638_v1 }
0x1237   :  { %v4731_v16 = vpop.f32.mrf.mxu0 }
0x1238   :  { %v4732_v18 = vadd.f32 %v4731_v16, %v4652_v47 }
0x1239   :  { %v4733_v19 = vpop.f32.mrf.mxu0 }
0x123a   :  { %v4734_v20 = vadd.f32 %v4733_v19, %v4656_v15  ;;  %v4742_v24 = vmax.f32 %v4732_v18, 0.0 }
0x123c   :  { %v4743_v22 = vmax.f32 %v4734_v20, 0.0 }
0x123e   :  { %4849 = vmatprep.mubr.f32.mxu1 %v4743_v22 }
0x123f   :  { %4850 = vmatmul.mubr.f32.vlgmr.msra.gmra.mxu1 %v4742_v24 }
0x12c4   :  { %v4737_v6 = vpop.f32.mrf.mxu0 }
0x12c5   :  { %v4738_v4 = vadd.f32 %v4737_v6, %v4652_v47 }
0x12c6   :  { %v4739_v25 = vpop.f32.mrf.mxu0 }
0x12c7   :  { %v4740_v27 = vadd.f32 %v4739_v25, %v4656_v15  ;;  %v4744_v29 = vmax.f32 %v4738_v4, 0.0 }
0x12c9   :  { %v4745_v28 = vmax.f32 %v4740_v27, 0.0 }
0x12cb   :  { %4854 = vmatprep.mubr.f32.mxu1 %v4745_v28 }
0x12cc   :  { %4855 = vmatmul.mubr.f32.gmra.mxu1 %v4744_v29 }
0x12ff   :  { %v5168_v21 = vpop.f32.mrf.mxu1 }
0x1301   :  { %v5169_v30 = vpop.f32.mrf.mxu1 }
0x1302   :  { %v5170_v36 = vadd.f32 %v5169_v30, %v5168_v21 }
0x1304   :  { %v4852_v5 = vadd.f32 %v5170_v36, %v4983_v35 }
0x138c   :  { %v5171_v32 = vpop.f32.mrf.mxu1 }
0x138e   :  { %v5172_v34 = vpop.f32.mrf.mxu1 }
0x138f   :  { %v5173_v3 = vadd.f32 %v5172_v34, %v5171_v32 }
0x1391   :  { %v4857_v26 = vadd.f32 %v5173_v3, %v4983_v35 }
0x1393   :  { %4861 = vrot.lane.b32.xlu0 %v4857_v26, %s5626_s28 }
0x1405   :  { %v4862_v17 = vpop.permute.xlu0 %4861 }
0x1406   :  { %v4865_v14 = vsel %vm4864_vm4, %v4852_v5, %v4862_v17 }
0x1407   :  { %4866 = vst [vmem:[#allocation2] sm:$0xff] %v4865_v14 }
0x1408   :  { %5609 = shalt.err (!%p5606_p4)
}
0x1409   :  { %4876 = dma.vmem_to_hbm [thread:$0]  %s4874_s29, 128, %s6554_s26, [#allocation3]  }
0x140a   :  { %5618 = dma.done.wait [#allocation3], 128  }
0x140b   :  { %5619 = vsyncadd [#allocation3], 4294967168 }
0x140c   :  { %4880 = vsyncpa [#allocation3], 1 }

</bundles_post_ra>
